<compile_context>
chip_gen: v5e
topology: v5e:2x2
jax: 0.10.0
libtpu: 0.0.40
codegen_flags: <defaults>
</compile_context>

<pallas_src>
import functools
import math

import jax
import jax.numpy as jnp
from jax.experimental import pallas as pl
from jax.experimental.pallas import tpu as pltpu


# ----------------------------- Config ----------------------------------------
class Config:
    dim = 64
    n_heads = 4
    n_kv_heads = 2
    head_dim = 16               # matches config.head_dim
    ffn_hidden_size = 128
    max_seq_len = 16
    rope_theta = 10000.0
    norm_eps = 1e-5
    use_qk_normalization = False


CFG = Config()


# ----------------------------- Shared helpers ---------------------------------
def _rotate_half(x):
    """rotate_half along the last axis (interleaved mistral/llama RoPE layout)."""
    xr = x.reshape(*x.shape[:-1], -1, 2)
    x1, x2 = xr[..., 0], xr[..., 1]
    return jnp.stack((-x2, x1), axis=-1).reshape(x.shape)


# ----------------------------- Fused stack kernel ------------------------------
def _stack_kernel(x_ref, cos_q_ref, sin_q_ref, cos_k_ref, sin_k_ref,
                  wqkv_ref, wo_ref, w13_ref, w2_ref, o_ref, h_ref,
                  *, batch, seq, n_heads, n_kv_heads, head_dim, ffn_hidden, eps):
    l = pl.program_id(0)
    BS = batch * seq
    hd = head_dim
    Hq = n_heads * hd
    Hk = n_kv_heads * hd
    n_rep = n_heads // n_kv_heads

    # ---- load the input activations only at the first layer; carry in VMEM scratch ----
    @pl.when(l == 0)
    def _():
        h_ref[...] = x_ref[...].astype(jnp.float32)

    h = h_ref[...]                                                        # (BS, dim)

    # ---- RMSNorm (attention); gamma folded into wqkv at pack time ----
    a = h * jax.lax.rsqrt(jnp.mean(h * h, axis=-1, keepdims=True) + eps)

    # ---- fused QKV projection; 1/sqrt(hd) and RoPE rotate-half folded into the weight ----
    qkv = jnp.dot(a, wqkv_ref[...], preferred_element_type=jnp.float32)   # (BS, 2Hq+3Hk)
    q = qkv[:, :Hq] * cos_q_ref[...] + qkv[:, Hq:2 * Hq] * sin_q_ref[...]
    k = (qkv[:, 2 * Hq:2 * Hq + Hk] * cos_k_ref[...]
         + qkv[:, 2 * Hq + Hk:2 * Hq + 2 * Hk] * sin_k_ref[...])
    v = qkv[:, 2 * Hq + 2 * Hk:]

    # ---- block-diagonal causal additive bias, built once in-kernel (no mask input) ----
    r = jax.lax.broadcasted_iota(jnp.int32, (BS, BS), 0)
    c = jax.lax.broadcasted_iota(jnp.int32, (BS, BS), 1)
    if seq & (seq - 1) == 0:                       # power-of-two: shift/and (cheap VPU ops)
        sh = seq.bit_length() - 1
        rb, cb = r >> sh, c >> sh
        rp, cp = r & (seq - 1), c & (seq - 1)
    else:
        rb, cb = r // seq, c // seq
        rp, cp = r % seq, c % seq
    attend = (rb == cb) & (cp <= rp)
    bias = jnp.where(attend, 0.0, -1e30).astype(jnp.float32)              # (BS, BS)

    # ---- attention (GQA via static index math); all heads written into one (BS, Hq) slab ----
    dn = (((1,), (1,)), ((), ()))                                         # contract last dims
    heads_out = []
    for hidx in range(n_heads):
        g = hidx // n_rep
        qh = q[:, hidx * hd:(hidx + 1) * hd]                              # (BS, hd)
        kh = k[:, g * hd:(g + 1) * hd]
        vh = v[:, g * hd:(g + 1) * hd]
        s = jax.lax.dot_general(qh, kh, dn,
                                preferred_element_type=jnp.float32) + bias
        m = jnp.max(s, axis=-1, keepdims=True)
        p = jnp.exp(s - m)
        denom = jnp.sum(p, axis=-1, keepdims=True)
        oh = jnp.dot(p, vh, preferred_element_type=jnp.float32)           # (BS, hd)
        heads_out.append(oh * pl.reciprocal(denom, approx=True))          # deferred normalization
    o_all = jnp.concatenate(heads_out, axis=-1)                           # (BS, Hq)
    h1 = h + jnp.dot(o_all, wo_ref[...], preferred_element_type=jnp.float32)   # single wo matmul

    # ---- RMSNorm (ffn, gamma folded) + SwiGLU (packed w1|w3) + residual ----
    f = h1 * jax.lax.rsqrt(jnp.mean(h1 * h1, axis=-1, keepdims=True) + eps)
    h13 = jnp.dot(f, w13_ref[...], preferred_element_type=jnp.float32)    # (BS, 2F)
    g1 = h13[:, :ffn_hidden]
    g3 = h13[:, ffn_hidden:]
    out = h1 + jnp.dot(g1 * jax.nn.sigmoid(g1) * g3, w2_ref[...],
                       preferred_element_type=jnp.float32)

    h_ref[...] = out                                                      # carry to next layer

    @pl.when(l == pl.num_programs(0) - 1)
    def _():
        o_ref[...] = out.astype(o_ref.dtype)


def transformer_stack_pallas(x, stacked, cos_q, sin_q, cos_k, sin_k, cfg):
    """All TransformerBlocks as ONE fused pallas_call; grid iterates over layers."""
    B, S, dim = x.shape
    L = stacked["wqkv"].shape[0]
    Hq = cfg.n_heads * cfg.head_dim
    Hk = cfg.n_kv_heads * cfg.head_dim
    F = cfg.ffn_hidden_size
    BS = B * S
    x2 = x.reshape(BS, dim)

    kernel = functools.partial(
        _stack_kernel,
        batch=B, seq=S, n_heads=cfg.n_heads, n_kv_heads=cfg.n_kv_heads,
        head_dim=cfg.head_dim, ffn_hidden=F, eps=cfg.norm_eps)

    def act(shape):                      # activation-like input: same block every layer step
        return pl.BlockSpec(shape, lambda l: (0, 0))

    def wgt(shape):                      # per-layer weight: leading layer axis squeezed out
        return pl.BlockSpec((None,) + shape, lambda l: (l, 0, 0))

    out = pl.pallas_call(
        kernel,
        out_shape=jax.ShapeDtypeStruct((BS, dim), x.dtype),
        grid=(L,),
        in_specs=[
            act((BS, dim)),              # x (DMA'd once; constant block index)
            act((BS, Hq)), act((BS, Hq)),    # cos_q, sin_q
            act((BS, Hk)), act((BS, Hk)),    # cos_k, sin_k
            wgt((dim, 2 * Hq + 3 * Hk)),     # packed [wq*s | wq*s rot | wk | wk rot | wv]
            wgt((Hq, dim)),                  # wo (pre-transposed)
            wgt((dim, 2 * F)),               # packed [w1 | w3] (gamma folded)
            wgt((F, dim)),                   # w2 (pre-transposed)
        ],
        out_specs=pl.BlockSpec((BS, dim), lambda l: (0, 0)),
        scratch_shapes=[pltpu.VMEM((BS, dim), jnp.float32)],   # activation carry across layers
        compiler_params=pltpu.CompilerParams(
            dimension_semantics=("arbitrary",)),               # layers are sequential
    )(x2, cos_q, sin_q, cos_k, sin_k,
      stacked["wqkv"], stacked["wo_t"], stacked["w13"], stacked["w2_t"])
    return out.reshape(B, S, dim)


def forward(x, stacked, cos, sin, input_pos, *, cfg):
    """Full stack forward (position-dependent RoPE glue stays in JAX, runs once per call)."""
    # TODO(synk): prefill-only (zero KV cache, input_pos = arange(S)); enforced in __main__.
    B, S, _ = x.shape
    cos_sel = cos[input_pos]                                   # (S, hd)
    sin_sel = sin[input_pos]
    cos_q = jnp.tile(cos_sel, (B, cfg.n_heads))                # (B*S, Hq), batch-major rows
    sin_q = jnp.tile(sin_sel, (B, cfg.n_heads))
    cos_k = jnp.tile(cos_sel, (B, cfg.n_kv_heads))             # (B*S, Hk)
    sin_k = jnp.tile(sin_sel, (B, cfg.n_kv_heads))
    return transformer_stack_pallas(x, stacked, cos_q, sin_q, cos_k, sin_k, cfg)


# ----------------------------- Param init & one-time packing -------------------
def init_block_params(key, cfg):
    """Torch nn.Linear layout: weight shape (out_features, in_features)."""
    def w(k, shape, scale=0.05):
        return scale * jax.random.normal(k, shape, jnp.float32)
    ks = jax.random.split(key, 9)
    return {
        "wq": w(ks[0], (cfg.n_heads * cfg.head_dim, cfg.dim)),
        "wk": w(ks[1], (cfg.n_kv_heads * cfg.head_dim, cfg.dim)),
        "wv": w(ks[2], (cfg.n_kv_heads * cfg.head_dim, cfg.dim)),
        "wo": w(ks[3], (cfg.dim, cfg.n_heads * cfg.head_dim)),
        "w1": w(ks[4], (cfg.ffn_hidden_size, cfg.dim)),
        "w2": w(ks[5], (cfg.dim, cfg.ffn_hidden_size)),
        "w3": w(ks[6], (cfg.ffn_hidden_size, cfg.dim)),
        "attention_norm": 1.0 + 0.1 * jax.random.normal(ks[7], (cfg.dim,), jnp.float32),
        "ffn_norm": 1.0 + 0.1 * jax.random.normal(ks[8], (cfg.dim,), jnp.float32),
    }


def pack_stack_params(layer_params, cfg):
    """One-time packing: pre-transpose, fold attention scale + RMSNorm gammas + RoPE rotate-half
    into the weights, pack QKV and w1|w3, and stack all layers on a leading axis."""
    scale = 1.0 / math.sqrt(cfg.head_dim)
    wqkv_l, wo_l, w13_l, w2_l = [], [], [], []
    for p in layer_params:
        g_attn = p["attention_norm"][:, None]                    # (dim, 1), folded into rows
        g_ffn = p["ffn_norm"][:, None]
        wq_t = p["wq"].T * scale                                 # (dim, Hq), scale folded
        wk_t = p["wk"].T                                         # (dim, Hk)
        wv_t = p["wv"].T                                         # (dim, Hk)
        # exact column-wise rotate_half fold: a @ _rotate_half(W) == rotate_half(a @ W)
        wqkv = jnp.concatenate(
            [wq_t, _rotate_half(wq_t), wk_t, _rotate_half(wk_t), wv_t], axis=1)
        wqkv_l.append(g_attn * wqkv)                             # fold attention-norm gamma
        wo_l.append(p["wo"].T)
        w13_l.append(g_ffn * jnp.concatenate([p["w1"].T, p["w3"].T], axis=1))  # fold ffn gamma
        w2_l.append(p["w2"].T)
    return {
        "wqkv": jnp.stack(wqkv_l),    # (L, dim, 2*Hq + 3*Hk)
        "wo_t": jnp.stack(wo_l),      # (L, Hq, dim)
        "w13": jnp.stack(w13_l),      # (L, dim, 2*F)
        "w2_t": jnp.stack(w2_l),      # (L, F, dim)
    }


def rope_cos_sin(head_dim, max_seq_len, theta):
    inv_freq = 1.0 / (theta ** (jnp.arange(0, head_dim, 2, dtype=jnp.float32) / head_dim))
    seq = jnp.arange(max_seq_len, dtype=jnp.float32)
    freqs = jnp.einsum("i,j->ij", seq, inv_freq)
    emb = jnp.stack((freqs, freqs), axis=-1).reshape(max_seq_len, -1)     # interleaved
    return jnp.cos(emb), jnp.sin(emb)


# ----------------------------- Pure-JAX reference (mirrors the torch module) ----
def _rmsnorm_ref(x, g, eps):
    xf = x.astype(jnp.float32)
    return xf * jax.lax.rsqrt(jnp.mean(xf * xf, axis=-1, keepdims=True) + eps) * g


def transformer_block_ref(x, p, cos, sin, input_pos, cfg):
    B, S, _ = x.shape
    H, Hkv, hd = cfg.n_heads, cfg.n_kv_heads, cfg.head_dim
    n_rep = H // Hkv
    hp = jax.lax.Precision.HIGHEST

    a = _rmsnorm_ref(x, p["attention_norm"], cfg.norm_eps)
    xq = jnp.dot(a, p["wq"].T, precision=hp).reshape(B, S, H, hd)
    xk = jnp.dot(a, p["wk"].T, precision=hp).reshape(B, S, Hkv, hd)
    xv = jnp.dot(a, p["wv"].T, precision=hp).reshape(B, S, Hkv, hd)

    c = cos[input_pos][None, :, None, :]
    s = sin[input_pos][None, :, None, :]
    xq = xq * c + _rotate_half(xq) * s
    xk = xk * c + _rotate_half(xk) * s

    xq, xk, xv = (t.transpose(0, 2, 1, 3) for t in (xq, xk, xv))
    T = cfg.max_seq_len
    cache_k = jnp.zeros((B, Hkv, T, hd), jnp.float32).at[:, :, input_pos].set(xk)
    cache_v = jnp.zeros((B, Hkv, T, hd), jnp.float32).at[:, :, input_pos].set(xv)
    keys = jnp.repeat(cache_k, n_rep, axis=1)
    vals = jnp.repeat(cache_v, n_rep, axis=1)

    mask = jnp.arange(T)[None, :] <= input_pos[:, None]                   # (S, T), True = attend
    scores = jnp.einsum("bhsd,bhtd->bhst", xq, keys, precision=hp) / math.sqrt(hd)
    scores = jnp.where(mask[None, None], scores, -jnp.inf)
    probs = jax.nn.softmax(scores, axis=-1)
    out = jnp.einsum("bhst,bhtd->bhsd", probs, vals, precision=hp)
    out = out.transpose(0, 2, 1, 3).reshape(B, S, H * hd)
    h = x + jnp.dot(out, p["wo"].T, precision=hp)

    f = _rmsnorm_ref(h, p["ffn_norm"], cfg.norm_eps)
    h1 = jnp.dot(f, p["w1"].T, precision=hp)
    h3 = jnp.dot(f, p["w3"].T, precision=hp)
    return h + jnp.dot(h1 * jax.nn.sigmoid(h1) * h3, p["w2"].T, precision=hp)


# ----------------------------- Main --------------------------------------------
if __name__ == "__main__":
    cfg = CFG
    key = jax.random.PRNGKey(0)
    kx, k0, k1 = jax.random.split(key, 3)

    B, S = 2, 8
    x = jax.random.normal(kx, (B, S, cfg.dim), dtype=jnp.float32)
    input_pos = jnp.arange(S, dtype=jnp.int32)

    # Enforce the prefill-only assumption (zero KV cache + causal over current tokens).
    assert bool(jnp.all(input_pos == jnp.arange(S))), "fused kernel implements causal prefill only"

    layer_params = [init_block_params(k0, cfg), init_block_params(k1, cfg)]
    stacked = pack_stack_params(layer_params, cfg)              # packed ONCE, outside fwd
    cos, sin = rope_cos_sin(cfg.head_dim, cfg.max_seq_len, cfg.rope_theta)

    fwd = jax.jit(functools.partial(forward, cfg=cfg))
    out = fwd(x, stacked, cos, sin, input_pos)
    jax.block_until_ready(out)

    # Pure-JAX reference (faithful to the torch module, including the full KV-cache path).
    ref = x
    for p in layer_params:
        ref = transformer_block_ref(ref, p, cos, sin, input_pos, cfg)

    assert out.shape == (B, S, cfg.dim)
    assert bool(jnp.all(jnp.isfinite(out)))
    max_err = float(jnp.max(jnp.abs(out - ref)))
    assert max_err < 5e-3, f"mismatch vs reference: max abs err = {max_err}"
    print("KERNEL_OK")
</pallas_src>

<mosaic_0001>
module attributes {stable_mosaic.version = 11 : i64} {
  func.func @_stack_kernel(%arg0: i32, %arg1: memref<16x64xf32, #tpu.memory_space<vmem>>, %arg2: memref<16x64xf32, #tpu.memory_space<vmem>>, %arg3: memref<16x64xf32, #tpu.memory_space<vmem>>, %arg4: memref<16x32xf32, #tpu.memory_space<vmem>>, %arg5: memref<16x32xf32, #tpu.memory_space<vmem>>, %arg6: memref<1x64x224xf32, #tpu.memory_space<vmem>>, %arg7: memref<1x64x64xf32, #tpu.memory_space<vmem>>, %arg8: memref<1x64x256xf32, #tpu.memory_space<vmem>>, %arg9: memref<1x128x64xf32, #tpu.memory_space<vmem>>, %arg10: memref<16x64xf32, #tpu.memory_space<vmem>>, %arg11: memref<16x64xf32, #tpu.memory_space<vmem>>) attributes {dimension_semantics = [#tpu.dimension_semantics<arbitrary>], iteration_bounds = array<i64: 2>, scalar_prefetch = 0 : i64, scratch_operands = 1 : i64, tpu.core_type = #tpu.core_type<tc>, window_params = [{pipeline_mode = #tpu.pipeline_mode<synchronous>, transform_indices = @transform_0, window_bounds = array<i64: 16, 64>}, {pipeline_mode = #tpu.pipeline_mode<synchronous>, transform_indices = @transform_1, window_bounds = array<i64: 16, 64>}, {pipeline_mode = #tpu.pipeline_mode<synchronous>, transform_indices = @transform_2, window_bounds = array<i64: 16, 64>}, {pipeline_mode = #tpu.pipeline_mode<synchronous>, transform_indices = @transform_3, window_bounds = array<i64: 16, 32>}, {pipeline_mode = #tpu.pipeline_mode<synchronous>, transform_indices = @transform_4, window_bounds = array<i64: 16, 32>}, {transform_indices = @transform_5, window_bounds = array<i64: 1, 64, 224>}, {transform_indices = @transform_6, window_bounds = array<i64: 1, 64, 64>}, {transform_indices = @transform_7, window_bounds = array<i64: 1, 64, 256>}, {transform_indices = @transform_8, window_bounds = array<i64: 1, 128, 64>}, {pipeline_mode = #tpu.pipeline_mode<synchronous>, transform_indices = @transform_9, window_bounds = array<i64: 16, 64>}]} {
    %c0_i32 = arith.constant 0 : i32
    %0 = arith.cmpi eq, %arg0, %c0_i32 : i32
    %1 = arith.extui %0 : i1 to i32
    %c0_i32_0 = arith.constant 0 : i32
    %2 = arith.cmpi ne, %1, %c0_i32_0 : i32
    scf.if %2 {
      %c0_55 = arith.constant 0 : index
      %c0_56 = arith.constant 0 : index
      %147 = vector.load %arg1[%c0_55, %c0_56] : memref<16x64xf32, #tpu.memory_space<vmem>>, vector<16x64xf32>
      %c0_57 = arith.constant 0 : index
      %c0_58 = arith.constant 0 : index
      %148 = vector.load %arg11[%c0_57, %c0_58] : memref<16x64xf32, #tpu.memory_space<vmem>>, vector<16x64xf32>
      tpu.vector_store %arg11[%c0_57, %c0_58], %147 {strides = array<i32>} : memref<16x64xf32, #tpu.memory_space<vmem>>, vector<16x64xf32>,
    } else {
    }
    %c0 = arith.constant 0 : index
    %c0_1 = arith.constant 0 : index
    %3 = vector.load %arg11[%c0, %c0_1] : memref<16x64xf32, #tpu.memory_space<vmem>>, vector<16x64xf32>
    %4 = arith.mulf %3, %3 : vector<16x64xf32>
    %cst = arith.constant dense<0.000000e+00> : vector<16xf32>
    %5 = vector.multi_reduction <add>, %4, %cst [1] : vector<16x64xf32> to vector<16xf32>
    %6 = vector.shape_cast %5 : vector<16xf32> to vector<16x1xf32>
    %cst_2 = arith.constant 6.400000e+01 : f32
    %7 = vector.broadcast %cst_2 : f32 to vector<16x1xf32>
    %8 = arith.divf %6, %7 : vector<16x1xf32>
    %cst_3 = arith.constant 9.99999974E-6 : f32
    %9 = vector.broadcast %cst_3 : f32 to vector<16x1xf32>
    %10 = arith.addf %8, %9 : vector<16x1xf32>
    %11 = math.rsqrt %10 : vector<16x1xf32>
    %12 = vector.broadcast %11 : vector<16x1xf32> to vector<16x64xf32>
    %13 = arith.mulf %3, %12 : vector<16x64xf32>
    %c0_4 = arith.constant 0 : index
    %c0_5 = arith.constant 0 : index
    %c0_6 = arith.constant 0 : index
    %14 = vector.load %arg6[%c0_4, %c0_5, %c0_6] : memref<1x64x224xf32, #tpu.memory_space<vmem>>, vector<1x64x224xf32>
    %15 = vector.shape_cast %14 : vector<1x64x224xf32> to vector<64x224xf32>
    %cst_7 = arith.constant dense<0.000000e+00> : vector<16x224xf32>
    %16 = tpu.matmul %13, %15, %cst_7 {dimension_numbers = #tpu.dot_dimension_numbers<[1], [0], [0], [1], [0, 0, 1, 1], [], []>} : vector<16x64xf32>, vector<64x224xf32>, vector<16x224xf32> -> vector<16x224xf32>
    %17 = vector.extract_strided_slice %16 {offsets = [0, 0], sizes = [16, 64], strides = [1, 1]} : vector<16x224xf32> to vector<16x64xf32>
    %c0_8 = arith.constant 0 : index
    %c0_9 = arith.constant 0 : index
    %18 = vector.load %arg2[%c0_8, %c0_9] : memref<16x64xf32, #tpu.memory_space<vmem>>, vector<16x64xf32>
    %19 = arith.mulf %17, %18 : vector<16x64xf32>
    %20 = vector.extract_strided_slice %16 {offsets = [0, 64], sizes = [16, 64], strides = [1, 1]} : vector<16x224xf32> to vector<16x64xf32>
    %c0_10 = arith.constant 0 : index
    %c0_11 = arith.constant 0 : index
    %21 = vector.load %arg3[%c0_10, %c0_11] : memref<16x64xf32, #tpu.memory_space<vmem>>, vector<16x64xf32>
    %22 = arith.mulf %20, %21 : vector<16x64xf32>
    %23 = arith.addf %19, %22 : vector<16x64xf32>
    %24 = vector.extract_strided_slice %16 {offsets = [0, 128], sizes = [16, 32], strides = [1, 1]} : vector<16x224xf32> to vector<16x32xf32>
    %c0_12 = arith.constant 0 : index
    %c0_13 = arith.constant 0 : index
    %25 = vector.load %arg4[%c0_12, %c0_13] : memref<16x32xf32, #tpu.memory_space<vmem>>, vector<16x32xf32>
    %26 = arith.mulf %24, %25 : vector<16x32xf32>
    %27 = vector.extract_strided_slice %16 {offsets = [0, 160], sizes = [16, 32], strides = [1, 1]} : vector<16x224xf32> to vector<16x32xf32>
    %c0_14 = arith.constant 0 : index
    %c0_15 = arith.constant 0 : index
    %28 = vector.load %arg5[%c0_14, %c0_15] : memref<16x32xf32, #tpu.memory_space<vmem>>, vector<16x32xf32>
    %29 = arith.mulf %27, %28 : vector<16x32xf32>
    %30 = arith.addf %26, %29 : vector<16x32xf32>
    %31 = vector.extract_strided_slice %16 {offsets = [0, 192], sizes = [16, 32], strides = [1, 1]} : vector<16x224xf32> to vector<16x32xf32>
    %32 = tpu.iota {dimensions = array<i32: 0>} : vector<16x16xi32>
    %33 = tpu.iota {dimensions = array<i32: 1>} : vector<16x16xi32>
    %c3_i32 = arith.constant 3 : i32
    %34 = vector.broadcast %c3_i32 : i32 to vector<16x16xi32>
    %35 = arith.shrsi %32, %34 : vector<16x16xi32>
    %c3_i32_16 = arith.constant 3 : i32
    %36 = vector.broadcast %c3_i32_16 : i32 to vector<16x16xi32>
    %37 = arith.shrsi %33, %36 : vector<16x16xi32>
    %c7_i32 = arith.constant 7 : i32
    %38 = vector.broadcast %c7_i32 : i32 to vector<16x16xi32>
    %39 = arith.andi %32, %38 : vector<16x16xi32>
    %c7_i32_17 = arith.constant 7 : i32
    %40 = vector.broadcast %c7_i32_17 : i32 to vector<16x16xi32>
    %41 = arith.andi %33, %40 : vector<16x16xi32>
    %42 = arith.cmpi eq, %35, %37 : vector<16x16xi32>
    %43 = arith.cmpi sle, %41, %39 : vector<16x16xi32>
    %44 = arith.andi %42, %43 : vector<16x16xi1>
    %cst_18 = arith.constant 0.000000e+00 : f32
    %cst_19 = arith.constant -1.000000e+30 : f32
    %45 = vector.broadcast %cst_18 : f32 to vector<16x16xf32>
    %46 = vector.broadcast %cst_19 : f32 to vector<16x16xf32>
    %47 = arith.select %44, %45, %46 : vector<16x16xi1>, vector<16x16xf32>
    %48 = vector.extract_strided_slice %23 {offsets = [0, 0], sizes = [16, 16], strides = [1, 1]} : vector<16x64xf32> to vector<16x16xf32>
    %49 = vector.extract_strided_slice %30 {offsets = [0, 0], sizes = [16, 16], strides = [1, 1]} : vector<16x32xf32> to vector<16x16xf32>
    %50 = vector.extract_strided_slice %31 {offsets = [0, 0], sizes = [16, 16], strides = [1, 1]} : vector<16x32xf32> to vector<16x16xf32>
    %cst_20 = arith.constant dense<0.000000e+00> : vector<16x16xf32>
    %51 = tpu.matmul %48, %49, %cst_20 {dimension_numbers = #tpu.dot_dimension_numbers<[1], [1], [0], [0], [0, 0, 1, 0], [], []>} : vector<16x16xf32>, vector<16x16xf32>, vector<16x16xf32> -> vector<16x16xf32>
    %52 = arith.addf %51, %47 : vector<16x16xf32>
    %cst_21 = arith.constant dense<0xFF800000> : vector<16xf32>
    %53 = vector.multi_reduction <maximumf>, %52, %cst_21 [1] : vector<16x16xf32> to vector<16xf32>
    %54 = vector.shape_cast %53 : vector<16xf32> to vector<16x1xf32>
    %55 = vector.broadcast %54 : vector<16x1xf32> to vector<16x16xf32>
    %56 = arith.subf %52, %55 : vector<16x16xf32>
    %57 = math.exp %56 : vector<16x16xf32>
    %cst_22 = arith.constant dense<0.000000e+00> : vector<16xf32>
    %58 = vector.multi_reduction <add>, %57, %cst_22 [1] : vector<16x16xf32> to vector<16xf32>
    %59 = vector.shape_cast %58 : vector<16xf32> to vector<16x1xf32>
    %cst_23 = arith.constant dense<0.000000e+00> : vector<16x16xf32>
    %60 = tpu.matmul %57, %50, %cst_23 {dimension_numbers = #tpu.dot_dimension_numbers<[1], [0], [0], [1], [0, 0, 1, 1], [], []>} : vector<16x16xf32>, vector<16x16xf32>, vector<16x16xf32> -> vector<16x16xf32>
    %61 = tpu.reciprocal %59 {approx = true} : vector<16x1xf32> -> vector<16x1xf32>
    %62 = vector.broadcast %61 : vector<16x1xf32> to vector<16x16xf32>
    %63 = arith.mulf %60, %62 : vector<16x16xf32>
    %64 = vector.extract_strided_slice %23 {offsets = [0, 16], sizes = [16, 16], strides = [1, 1]} : vector<16x64xf32> to vector<16x16xf32>
    %65 = vector.extract_strided_slice %30 {offsets = [0, 0], sizes = [16, 16], strides = [1, 1]} : vector<16x32xf32> to vector<16x16xf32>
    %66 = vector.extract_strided_slice %31 {offsets = [0, 0], sizes = [16, 16], strides = [1, 1]} : vector<16x32xf32> to vector<16x16xf32>
    %cst_24 = arith.constant dense<0.000000e+00> : vector<16x16xf32>
    %67 = tpu.matmul %64, %65, %cst_24 {dimension_numbers = #tpu.dot_dimension_numbers<[1], [1], [0], [0], [0, 0, 1, 0], [], []>} : vector<16x16xf32>, vector<16x16xf32>, vector<16x16xf32> -> vector<16x16xf32>
    %68 = arith.addf %67, %47 : vector<16x16xf32>
    %cst_25 = arith.constant dense<0xFF800000> : vector<16xf32>
    %69 = vector.multi_reduction <maximumf>, %68, %cst_25 [1] : vector<16x16xf32> to vector<16xf32>
    %70 = vector.shape_cast %69 : vector<16xf32> to vector<16x1xf32>
    %71 = vector.broadcast %70 : vector<16x1xf32> to vector<16x16xf32>
    %72 = arith.subf %68, %71 : vector<16x16xf32>
    %73 = math.exp %72 : vector<16x16xf32>
    %cst_26 = arith.constant dense<0.000000e+00> : vector<16xf32>
    %74 = vector.multi_reduction <add>, %73, %cst_26 [1] : vector<16x16xf32> to vector<16xf32>
    %75 = vector.shape_cast %74 : vector<16xf32> to vector<16x1xf32>
    %cst_27 = arith.constant dense<0.000000e+00> : vector<16x16xf32>
    %76 = tpu.matmul %73, %66, %cst_27 {dimension_numbers = #tpu.dot_dimension_numbers<[1], [0], [0], [1], [0, 0, 1, 1], [], []>} : vector<16x16xf32>, vector<16x16xf32>, vector<16x16xf32> -> vector<16x16xf32>
    %77 = tpu.reciprocal %75 {approx = true} : vector<16x1xf32> -> vector<16x1xf32>
    %78 = vector.broadcast %77 : vector<16x1xf32> to vector<16x16xf32>
    %79 = arith.mulf %76, %78 : vector<16x16xf32>
    %80 = vector.extract_strided_slice %23 {offsets = [0, 32], sizes = [16, 16], strides = [1, 1]} : vector<16x64xf32> to vector<16x16xf32>
    %81 = vector.extract_strided_slice %30 {offsets = [0, 16], sizes = [16, 16], strides = [1, 1]} : vector<16x32xf32> to vector<16x16xf32>
    %82 = vector.extract_strided_slice %31 {offsets = [0, 16], sizes = [16, 16], strides = [1, 1]} : vector<16x32xf32> to vector<16x16xf32>
    %cst_28 = arith.constant dense<0.000000e+00> : vector<16x16xf32>
    %83 = tpu.matmul %80, %81, %cst_28 {dimension_numbers = #tpu.dot_dimension_numbers<[1], [1], [0], [0], [0, 0, 1, 0], [], []>} : vector<16x16xf32>, vector<16x16xf32>, vector<16x16xf32> -> vector<16x16xf32>
    %84 = arith.addf %83, %47 : vector<16x16xf32>
    %cst_29 = arith.constant dense<0xFF800000> : vector<16xf32>
    %85 = vector.multi_reduction <maximumf>, %84, %cst_29 [1] : vector<16x16xf32> to vector<16xf32>
    %86 = vector.shape_cast %85 : vector<16xf32> to vector<16x1xf32>
    %87 = vector.broadcast %86 : vector<16x1xf32> to vector<16x16xf32>
    %88 = arith.subf %84, %87 : vector<16x16xf32>
    %89 = math.exp %88 : vector<16x16xf32>
    %cst_30 = arith.constant dense<0.000000e+00> : vector<16xf32>
    %90 = vector.multi_reduction <add>, %89, %cst_30 [1] : vector<16x16xf32> to vector<16xf32>
    %91 = vector.shape_cast %90 : vector<16xf32> to vector<16x1xf32>
    %cst_31 = arith.constant dense<0.000000e+00> : vector<16x16xf32>
    %92 = tpu.matmul %89, %82, %cst_31 {dimension_numbers = #tpu.dot_dimension_numbers<[1], [0], [0], [1], [0, 0, 1, 1], [], []>} : vector<16x16xf32>, vector<16x16xf32>, vector<16x16xf32> -> vector<16x16xf32>
    %93 = tpu.reciprocal %91 {approx = true} : vector<16x1xf32> -> vector<16x1xf32>
    %94 = vector.broadcast %93 : vector<16x1xf32> to vector<16x16xf32>
    %95 = arith.mulf %92, %94 : vector<16x16xf32>
    %96 = vector.extract_strided_slice %23 {offsets = [0, 48], sizes = [16, 16], strides = [1, 1]} : vector<16x64xf32> to vector<16x16xf32>
    %97 = vector.extract_strided_slice %30 {offsets = [0, 16], sizes = [16, 16], strides = [1, 1]} : vector<16x32xf32> to vector<16x16xf32>
    %98 = vector.extract_strided_slice %31 {offsets = [0, 16], sizes = [16, 16], strides = [1, 1]} : vector<16x32xf32> to vector<16x16xf32>
    %cst_32 = arith.constant dense<0.000000e+00> : vector<16x16xf32>
    %99 = tpu.matmul %96, %97, %cst_32 {dimension_numbers = #tpu.dot_dimension_numbers<[1], [1], [0], [0], [0, 0, 1, 0], [], []>} : vector<16x16xf32>, vector<16x16xf32>, vector<16x16xf32> -> vector<16x16xf32>
    %100 = arith.addf %99, %47 : vector<16x16xf32>
    %cst_33 = arith.constant dense<0xFF800000> : vector<16xf32>
    %101 = vector.multi_reduction <maximumf>, %100, %cst_33 [1] : vector<16x16xf32> to vector<16xf32>
    %102 = vector.shape_cast %101 : vector<16xf32> to vector<16x1xf32>
    %103 = vector.broadcast %102 : vector<16x1xf32> to vector<16x16xf32>
    %104 = arith.subf %100, %103 : vector<16x16xf32>
    %105 = math.exp %104 : vector<16x16xf32>
    %cst_34 = arith.constant dense<0.000000e+00> : vector<16xf32>
    %106 = vector.multi_reduction <add>, %105, %cst_34 [1] : vector<16x16xf32> to vector<16xf32>
    %107 = vector.shape_cast %106 : vector<16xf32> to vector<16x1xf32>
    %cst_35 = arith.constant dense<0.000000e+00> : vector<16x16xf32>
    %108 = tpu.matmul %105, %98, %cst_35 {dimension_numbers = #tpu.dot_dimension_numbers<[1], [0], [0], [1], [0, 0, 1, 1], [], []>} : vector<16x16xf32>, vector<16x16xf32>, vector<16x16xf32> -> vector<16x16xf32>
    %109 = tpu.reciprocal %107 {approx = true} : vector<16x1xf32> -> vector<16x1xf32>
    %110 = vector.broadcast %109 : vector<16x1xf32> to vector<16x16xf32>
    %111 = arith.mulf %108, %110 : vector<16x16xf32>
    %112 = tpu.concatenate %63, %79, %95, %111 in 1 : vector<16x16xf32>, vector<16x16xf32>, vector<16x16xf32>, vector<16x16xf32> -> vector<16x64xf32>
    %c0_36 = arith.constant 0 : index
    %c0_37 = arith.constant 0 : index
    %c0_38 = arith.constant 0 : index
    %113 = vector.load %arg7[%c0_36, %c0_37, %c0_38] : memref<1x64x64xf32, #tpu.memory_space<vmem>>, vector<1x64x64xf32>
    %114 = vector.shape_cast %113 : vector<1x64x64xf32> to vector<64x64xf32>
    %cst_39 = arith.constant dense<0.000000e+00> : vector<16x64xf32>
    %115 = tpu.matmul %112, %114, %cst_39 {dimension_numbers = #tpu.dot_dimension_numbers<[1], [0], [0], [1], [0, 0, 1, 1], [], []>} : vector<16x64xf32>, vector<64x64xf32>, vector<16x64xf32> -> vector<16x64xf32>
    %116 = arith.addf %3, %115 : vector<16x64xf32>
    %117 = arith.mulf %116, %116 : vector<16x64xf32>
    %cst_40 = arith.constant dense<0.000000e+00> : vector<16xf32>
    %118 = vector.multi_reduction <add>, %117, %cst_40 [1] : vector<16x64xf32> to vector<16xf32>
    %119 = vector.shape_cast %118 : vector<16xf32> to vector<16x1xf32>
    %cst_41 = arith.constant 6.400000e+01 : f32
    %120 = vector.broadcast %cst_41 : f32 to vector<16x1xf32>
    %121 = arith.divf %119, %120 : vector<16x1xf32>
    %cst_42 = arith.constant 9.99999974E-6 : f32
    %122 = vector.broadcast %cst_42 : f32 to vector<16x1xf32>
    %123 = arith.addf %121, %122 : vector<16x1xf32>
    %124 = math.rsqrt %123 : vector<16x1xf32>
    %125 = vector.broadcast %124 : vector<16x1xf32> to vector<16x64xf32>
    %126 = arith.mulf %116, %125 : vector<16x64xf32>
    %c0_43 = arith.constant 0 : index
    %c0_44 = arith.constant 0 : index
    %c0_45 = arith.constant 0 : index
    %127 = vector.load %arg8[%c0_43, %c0_44, %c0_45] : memref<1x64x256xf32, #tpu.memory_space<vmem>>, vector<1x64x256xf32>
    %128 = vector.shape_cast %127 : vector<1x64x256xf32> to vector<64x256xf32>
    %cst_46 = arith.constant dense<0.000000e+00> : vector<16x256xf32>
    %129 = tpu.matmul %126, %128, %cst_46 {dimension_numbers = #tpu.dot_dimension_numbers<[1], [0], [0], [1], [0, 0, 1, 1], [], []>} : vector<16x64xf32>, vector<64x256xf32>, vector<16x256xf32> -> vector<16x256xf32>
    %130 = vector.extract_strided_slice %129 {offsets = [0, 0], sizes = [16, 128], strides = [1, 1]} : vector<16x256xf32> to vector<16x128xf32>
    %131 = vector.extract_strided_slice %129 {offsets = [0, 128], sizes = [16, 128], strides = [1, 1]} : vector<16x256xf32> to vector<16x128xf32>
    %132 = arith.negf %130 : vector<16x128xf32>
    %133 = math.exp %132 : vector<16x128xf32>
    %cst_47 = arith.constant 1.000000e+00 : f32
    %134 = vector.broadcast %cst_47 : f32 to vector<16x128xf32>
    %135 = arith.addf %134, %133 : vector<16x128xf32>
    %136 = arith.divf %134, %135 : vector<16x128xf32>
    %137 = arith.mulf %130, %136 : vector<16x128xf32>
    %138 = arith.mulf %137, %131 : vector<16x128xf32>
    %c0_48 = arith.constant 0 : index
    %c0_49 = arith.constant 0 : index
    %c0_50 = arith.constant 0 : index
    %139 = vector.load %arg9[%c0_48, %c0_49, %c0_50] : memref<1x128x64xf32, #tpu.memory_space<vmem>>, vector<1x128x64xf32>
    %140 = vector.shape_cast %139 : vector<1x128x64xf32> to vector<128x64xf32>
    %cst_51 = arith.constant dense<0.000000e+00> : vector<16x64xf32>
    %141 = tpu.matmul %138, %140, %cst_51 {dimension_numbers = #tpu.dot_dimension_numbers<[1], [0], [0], [1], [0, 0, 1, 1], [], []>} : vector<16x128xf32>, vector<128x64xf32>, vector<16x64xf32> -> vector<16x64xf32>
    %142 = arith.addf %116, %141 : vector<16x64xf32>
    %c0_52 = arith.constant 0 : index
    %c0_53 = arith.constant 0 : index
    %143 = vector.load %arg11[%c0_52, %c0_53] : memref<16x64xf32, #tpu.memory_space<vmem>>, vector<16x64xf32>
    tpu.vector_store %arg11[%c0_52, %c0_53], %142 {strides = array<i32>} : memref<16x64xf32, #tpu.memory_space<vmem>>, vector<16x64xf32>,
    %c1_i32 = arith.constant 1 : i32
    %144 = arith.cmpi eq, %arg0, %c1_i32 : i32
    %145 = arith.extui %144 : i1 to i32
    %c0_i32_54 = arith.constant 0 : i32
    %146 = arith.cmpi ne, %145, %c0_i32_54 : i32
    scf.if %146 {
      %c0_55 = arith.constant 0 : index
      %c0_56 = arith.constant 0 : index
      %147 = vector.load %arg10[%c0_55, %c0_56] : memref<16x64xf32, #tpu.memory_space<vmem>>, vector<16x64xf32>
      tpu.vector_store %arg10[%c0_55, %c0_56], %142 {strides = array<i32>} : memref<16x64xf32, #tpu.memory_space<vmem>>, vector<16x64xf32>,
    } else {
    }
    return
  }
  func.func @transform_0(%arg0: i32) -> (i32, i32) {
    %c0_i32 = arith.constant 0 : i32
    %c0_i32_0 = arith.constant 0 : i32
    %c0_i32_1 = arith.constant 0 : i32
    return %c0_i32, %c0_i32_0 : i32, i32
  }
  func.func @transform_1(%arg0: i32) -> (i32, i32) {
    %c0_i32 = arith.constant 0 : i32
    %c0_i32_0 = arith.constant 0 : i32
    %c0_i32_1 = arith.constant 0 : i32
    return %c0_i32, %c0_i32_0 : i32, i32
  }
  func.func @transform_2(%arg0: i32) -> (i32, i32) {
    %c0_i32 = arith.constant 0 : i32
    %c0_i32_0 = arith.constant 0 : i32
    %c0_i32_1 = arith.constant 0 : i32
    return %c0_i32, %c0_i32_0 : i32, i32
  }
  func.func @transform_3(%arg0: i32) -> (i32, i32) {
    %c0_i32 = arith.constant 0 : i32
    %c0_i32_0 = arith.constant 0 : i32
    %c0_i32_1 = arith.constant 0 : i32
    return %c0_i32, %c0_i32_0 : i32, i32
  }
  func.func @transform_4(%arg0: i32) -> (i32, i32) {
    %c0_i32 = arith.constant 0 : i32
    %c0_i32_0 = arith.constant 0 : i32
    %c0_i32_1 = arith.constant 0 : i32
    return %c0_i32, %c0_i32_0 : i32, i32
  }
  func.func @transform_5(%arg0: i32) -> (i32, i32, i32) {
    %c0_i32 = arith.constant 0 : i32
    %c0_i32_0 = arith.constant 0 : i32
    %c0_i32_1 = arith.constant 0 : i32
    return %arg0, %c0_i32, %c0_i32_0 : i32, i32, i32
  }
  func.func @transform_6(%arg0: i32) -> (i32, i32, i32) {
    %c0_i32 = arith.constant 0 : i32
    %c0_i32_0 = arith.constant 0 : i32
    %c0_i32_1 = arith.constant 0 : i32
    return %arg0, %c0_i32, %c0_i32_0 : i32, i32, i32
  }
  func.func @transform_7(%arg0: i32) -> (i32, i32, i32) {
    %c0_i32 = arith.constant 0 : i32
    %c0_i32_0 = arith.constant 0 : i32
    %c0_i32_1 = arith.constant 0 : i32
    return %arg0, %c0_i32, %c0_i32_0 : i32, i32, i32
  }
  func.func @transform_8(%arg0: i32) -> (i32, i32, i32) {
    %c0_i32 = arith.constant 0 : i32
    %c0_i32_0 = arith.constant 0 : i32
    %c0_i32_1 = arith.constant 0 : i32
    return %arg0, %c0_i32, %c0_i32_0 : i32, i32, i32
  }
  func.func @transform_9(%arg0: i32) -> (i32, i32) {
    %c0_i32 = arith.constant 0 : i32
    %c0_i32_0 = arith.constant 0 : i32
    %c0_i32_1 = arith.constant 0 : i32
    return %c0_i32, %c0_i32_0 : i32, i32
  }
}

</mosaic_0001>

<bundles_post_ra>
// kernel: tile.33
= control target key start
LH: loop header
LB: loop body
LE: loop exit
PB: predicated region body
PF: predicated region fallthrough
CT: control target
= control target key end

     0   :  { %s154_s0 = inlined_call_operand.vmem [shape: f32[8,16], index: 0, kind: input, shape index: {}]   ;;  %s155_s1 = inlined_call_operand.vmem [shape: f32[2,8,2,16], index: 1, kind: output, shape index: {}]  }
   0x1   :  { %v4_v0 = vld [vmem:[%s154_s0] ss:$0 sm:$0xff]  ;;  %v51_v1 = vld [vmem:[%s154_s0 + $0x1] ss:$0 sm:$0xff]  ;;  %v54_v2 = vld [vmem:[%s154_s0 + $0x2] ss:$0 sm:$0xff] }
   0x2   :  { %5 = vst [vmem:[%s155_s1] sm:$0x3] %v4_v0  ;;  %v57_v3 = vld [vmem:[%s154_s0 + $0x3] ss:$0 sm:$0xff]  ;;  %v60_v4 = vld [vmem:[%s154_s0 + $0x4] ss:$0 sm:$0xff] }
   0x3   :  { %50 = vst [vmem:[%s155_s1 + $0x10] sm:$0x3] %v4_v0  ;;  %v63_v5 = vld [vmem:[%s154_s0 + $0x5] ss:$0 sm:$0xff]  ;;  %v66_v6 = vld [vmem:[%s154_s0 + $0x6] ss:$0 sm:$0xff] }
   0x4   :  { %52 = vst [vmem:[%s155_s1 + $0x2] sm:$0x3] %v51_v1  ;;  %v69_v7 = vld [vmem:[%s154_s0 + $0x7] ss:$0 sm:$0xff] }
   0x5   :  { %53 = vst [vmem:[%s155_s1 + $0x12] sm:$0x3] %v51_v1 }
   0x6   :  { %55 = vst [vmem:[%s155_s1 + $0x4] sm:$0x3] %v54_v2 }
   0x7   :  { %56 = vst [vmem:[%s155_s1 + $0x14] sm:$0x3] %v54_v2 }
   0x8   :  { %58 = vst [vmem:[%s155_s1 + $0x6] sm:$0x3] %v57_v3 }
   0x9   :  { %59 = vst [vmem:[%s155_s1 + $0x16] sm:$0x3] %v57_v3 }
   0xa   :  { %61 = vst [vmem:[%s155_s1 + $0x8] sm:$0x3] %v60_v4 }
   0xb   :  { %62 = vst [vmem:[%s155_s1 + $0x18] sm:$0x3] %v60_v4 }
   0xc   :  { %64 = vst [vmem:[%s155_s1 + $0xa] sm:$0x3] %v63_v5 }
   0xd   :  { %65 = vst [vmem:[%s155_s1 + $0x1a] sm:$0x3] %v63_v5 }
   0xe   :  { %67 = vst [vmem:[%s155_s1 + $0xc] sm:$0x3] %v66_v6 }
   0xf   :  { %68 = vst [vmem:[%s155_s1 + $0x1c] sm:$0x3] %v66_v6 }
  0x10   :  { %70 = vst [vmem:[%s155_s1 + $0xe] sm:$0x3] %v69_v7 }
  0x11   :  { %71 = vst [vmem:[%s155_s1 + $0x1e] sm:$0x3] %v69_v7 }

// kernel: tile.28
= control target key start
LH: loop header
LB: loop body
LE: loop exit
PB: predicated region body
PF: predicated region fallthrough
CT: control target
= control target key end

     0   :  { %s154_s0 = inlined_call_operand.vmem [shape: f32[8,16], index: 0, kind: input, shape index: {}]   ;;  %s155_s1 = inlined_call_operand.vmem [shape: f32[2,8,4,16], index: 1, kind: output, shape index: {}]  }
   0x1   :  { %v4_v0 = vld [vmem:[%s154_s0] ss:$0 sm:$0xff]  ;;  %v51_v1 = vld [vmem:[%s154_s0 + $0x1] ss:$0 sm:$0xff]  ;;  %v54_v2 = vld [vmem:[%s154_s0 + $0x2] ss:$0 sm:$0xff] }
   0x2   :  { %5 = vst [vmem:[%s155_s1] sm:$0xf] %v4_v0  ;;  %v57_v3 = vld [vmem:[%s154_s0 + $0x3] ss:$0 sm:$0xff]  ;;  %v60_v4 = vld [vmem:[%s154_s0 + $0x4] ss:$0 sm:$0xff] }
   0x3   :  { %50 = vst [vmem:[%s155_s1 + $0x20] sm:$0xf] %v4_v0  ;;  %v63_v5 = vld [vmem:[%s154_s0 + $0x5] ss:$0 sm:$0xff]  ;;  %v66_v6 = vld [vmem:[%s154_s0 + $0x6] ss:$0 sm:$0xff] }
   0x4   :  { %52 = vst [vmem:[%s155_s1 + $0x4] sm:$0xf] %v51_v1  ;;  %v69_v7 = vld [vmem:[%s154_s0 + $0x7] ss:$0 sm:$0xff] }
   0x5   :  { %53 = vst [vmem:[%s155_s1 + $0x24] sm:$0xf] %v51_v1 }
   0x6   :  { %55 = vst [vmem:[%s155_s1 + $0x8] sm:$0xf] %v54_v2 }
   0x7   :  { %56 = vst [vmem:[%s155_s1 + $0x28] sm:$0xf] %v54_v2 }
   0x8   :  { %58 = vst [vmem:[%s155_s1 + $0xc] sm:$0xf] %v57_v3 }
   0x9   :  { %59 = vst [vmem:[%s155_s1 + $0x2c] sm:$0xf] %v57_v3 }
   0xa   :  { %61 = vst [vmem:[%s155_s1 + $0x10] sm:$0xf] %v60_v4 }
   0xb   :  { %62 = vst [vmem:[%s155_s1 + $0x30] sm:$0xf] %v60_v4 }
   0xc   :  { %64 = vst [vmem:[%s155_s1 + $0x14] sm:$0xf] %v63_v5 }
   0xd   :  { %65 = vst [vmem:[%s155_s1 + $0x34] sm:$0xf] %v63_v5 }
   0xe   :  { %67 = vst [vmem:[%s155_s1 + $0x18] sm:$0xf] %v66_v6 }
   0xf   :  { %68 = vst [vmem:[%s155_s1 + $0x38] sm:$0xf] %v66_v6 }
  0x10   :  { %70 = vst [vmem:[%s155_s1 + $0x1c] sm:$0xf] %v69_v7 }
  0x11   :  { %71 = vst [vmem:[%s155_s1 + $0x3c] sm:$0xf] %v69_v7 }

// kernel: tile.34
= control target key start
LH: loop header
LB: loop body
LE: loop exit
PB: predicated region body
PF: predicated region fallthrough
CT: control target
= control target key end

     0   :  { %vm68_vm0 = vcmask 1047556   ;;  %vm70_vm1 = vcmask 130048   ;;  %vm89_vm2 = vcmask 261248   ;;  %s195_s0 = inlined_call_operand.vmem [shape: f32[2,8,2,16], index: 0, kind: input, shape index: {}]   ;;  %s196_s1 = inlined_call_operand.vmem [shape: f32[16,32], index: 1, kind: output, shape index: {}]  }
   0x1   :  { %v110_v0 = vld [vmem:[%s195_s0 + $0xe] sm:$0x3]  ;;  %v111_v1 = vld [vmem:[%s195_s0 + $0xc] sm:$0x3]  ;;  %v112_v2 = vld [vmem:[%s195_s0 + $0xa] sm:$0x3] }
   0x2   :  { %39 = vst [vmem:[#allocation0 + $0x38] sm:$0x3] %v110_v0  ;;  %v113_v3 = vld [vmem:[%s195_s0 + $0x8] sm:$0x3]  ;;  %v114_v4 = vld [vmem:[%s195_s0 + $0x6] sm:$0x3] }
   0x3   :  { %43 = vst [vmem:[#allocation0 + $0x30] sm:$0x3] %v111_v1  ;;  %v115_v5 = vld [vmem:[%s195_s0 + $0x4] sm:$0x3]  ;;  %v116_v6 = vld [vmem:[%s195_s0 + $0x2] sm:$0x3] }
   0x4   :  { %47 = vst [vmem:[#allocation0 + $0x28] sm:$0x3] %v112_v2  ;;  %v64_v7 = vld [vmem:[%s195_s0] sm:$0x3]  ;;  %v102_v8 = vld [vmem:[%s195_s0 + $0x1e] sm:$0x3] }
   0x5   :  { %51 = vst [vmem:[#allocation0 + $0x20] sm:$0x3] %v113_v3  ;;  %v103_v9 = vld [vmem:[%s195_s0 + $0x1c] sm:$0x3]  ;;  %v104_v10 = vld [vmem:[%s195_s0 + $0x1a] sm:$0x3] }
   0x6   :  { %55 = vst [vmem:[#allocation0 + $0x18] sm:$0x3] %v114_v4  ;;  %v105_v11 = vld [vmem:[%s195_s0 + $0x18] sm:$0x3]  ;;  %v106_v12 = vld [vmem:[%s195_s0 + $0x16] sm:$0x3] }
   0x7   :  { %59 = vst [vmem:[#allocation0 + $0x10] sm:$0x3] %v115_v5  ;;  %v107_v13 = vld [vmem:[%s195_s0 + $0x14] sm:$0x3]  ;;  %v108_v14 = vld [vmem:[%s195_s0 + $0x12] sm:$0x3] }
   0x8   :  { %63 = vst [vmem:[#allocation0 + $0x8] sm:$0x3] %v116_v6  ;;  %v109_v15 = vld [vmem:[%s195_s0 + $0x10] sm:$0x3]  ;;  %s120_s0 = smov 16  }
   0x9   :  { %65 = vst [vmem:[#allocation0] sm:$0x3] %v64_v7 }
   0xa   :  { %7 = vst [vmem:[#allocation0 + $0x78] sm:$0x3] %v102_v8 }
   0xb   :  { %11 = vst [vmem:[#allocation0 + $0x70] sm:$0x3] %v103_v9 }
   0xc   :  { %15 = vst [vmem:[#allocation0 + $0x68] sm:$0x3] %v104_v10  ;;  %v84_v16 = vld [vmem:[#allocation0 + $0x1] ss:$8 sm:$0xf0]  }
   0xd   :  { %19 = vst [vmem:[#allocation0 + $0x60] sm:$0x3] %v105_v11  ;;  %v67_v23 = vld [vmem:[#allocation0] ss:$8 sm:$0xf0]  }
   0xe   :  { %23 = vst [vmem:[#allocation0 + $0x58] sm:$0x3] %v106_v12 }
   0xf   :  { %27 = vst [vmem:[#allocation0 + $0x50] sm:$0x3] %v107_v13 }
  0x10   :  { %v82_v17 = vld [vmem:[#allocation0 + $0x1] ss:$8 sm:$0xf]   ;;  %31 = vst [vmem:[#allocation0 + $0x48] sm:$0x3] %v108_v14 }
  0x11   :  { %v86_v18 = vsel %vm68_vm0, %v84_v16, %v82_v17  ;;  %35 = vst [vmem:[#allocation0 + $0x40] sm:$0x3] %v109_v15  ;;  %v66_v22 = vld [vmem:[#allocation0] ss:$8 sm:$0xf]  }
  0x12   :  { %87 = vrot.lane.b32.xlu0 %v86_v18, %s120_s0  ;;  %v69_v24 = vsel %vm68_vm0, %v67_v23, %v66_v22 }
  0x13   :  { %71 = vst.msk [vmem:[%s196_s1] sm:$0xff] %vm70_vm1, %v69_v24  }
  0x14   :  { %v94_v19 = vld [vmem:[#allocation0 + $0x41] ss:$8 sm:$0xf0]   ;;  %v75_v26 = vld [vmem:[#allocation0 + $0x40] ss:$8 sm:$0xf0]  }
  0x18   :  { %v92_v20 = vld [vmem:[#allocation0 + $0x41] ss:$8 sm:$0xf]   ;;  %v73_v25 = vld [vmem:[#allocation0 + $0x40] ss:$8 sm:$0xf]  }
  0x19   :  { %v96_v21 = vsel %vm68_vm0, %v94_v19, %v92_v20  ;;  %v77_v27 = vsel %vm68_vm0, %v75_v26, %v73_v25 }
  0x1a   :  { %97 = vrot.lane.b32.xlu0 %v96_v21, %s120_s0  ;;  %117 = vst.msk [vmem:[%s196_s1 + $0x8] sm:$0xff] %vm70_vm1, %v77_v27  }
  0x84   :  { %v88_v28 = vpop.permute.xlu0 %87  }
  0x85   :  { %90 = vst.msk [vmem:[%s196_s1] sm:$0xff] %vm89_vm2, %v88_v28  }
  0x8c   :  { %v98_v29 = vpop.permute.xlu0 %97  }
  0x8d   :  { %118 = vst.msk [vmem:[%s196_s1 + $0x8] sm:$0xff] %vm89_vm2, %v98_v29  }

// kernel: tile.29
= control target key start
LH: loop header
LB: loop body
LE: loop exit
PB: predicated region body
PF: predicated region fallthrough
CT: control target
= control target key end

     0   :  { %vm68_vm0 = vcmask 1047556   ;;  %s167_s9 = smov 32   ;;  %s168_s10 = smov 16   ;;  %vm70_vm1 = vcmask 130048   ;;  %vm89_vm2 = vcmask 523648   ;;  %vm110_vm3 = vcmask 392448   ;;  %s259_s0 = inlined_call_operand.vmem [shape: f32[2,8,4,16], index: 0, kind: input, shape index: {}]   ;;  %s260_s1 = inlined_call_operand.vmem [shape: f32[16,64], index: 1, kind: output, shape index: {}]  }
   0x1   :  { %v152_v0 = vld [vmem:[%s259_s0 + $0x1c] sm:$0xf]  ;;  %v153_v1 = vld [vmem:[%s259_s0 + $0x18] sm:$0xf]  ;;  %v154_v2 = vld [vmem:[%s259_s0 + $0x14] sm:$0xf] }
   0x2   :  { %39 = vst [vmem:[#allocation0 + $0x38] sm:$0xf] %v152_v0  ;;  %v155_v3 = vld [vmem:[%s259_s0 + $0x10] sm:$0xf]  ;;  %v156_v4 = vld [vmem:[%s259_s0 + $0xc] sm:$0xf] }
   0x3   :  { %43 = vst [vmem:[#allocation0 + $0x30] sm:$0xf] %v153_v1  ;;  %v157_v5 = vld [vmem:[%s259_s0 + $0x8] sm:$0xf]  ;;  %v158_v6 = vld [vmem:[%s259_s0 + $0x4] sm:$0xf] }
   0x4   :  { %47 = vst [vmem:[#allocation0 + $0x28] sm:$0xf] %v154_v2  ;;  %v64_v7 = vld [vmem:[%s259_s0] sm:$0xf]  ;;  %v144_v8 = vld [vmem:[%s259_s0 + $0x3c] sm:$0xf] }
   0x5   :  { %51 = vst [vmem:[#allocation0 + $0x20] sm:$0xf] %v155_v3  ;;  %v145_v9 = vld [vmem:[%s259_s0 + $0x38] sm:$0xf]  ;;  %v146_v10 = vld [vmem:[%s259_s0 + $0x34] sm:$0xf] }
   0x6   :  { %55 = vst [vmem:[#allocation0 + $0x18] sm:$0xf] %v156_v4  ;;  %v147_v11 = vld [vmem:[%s259_s0 + $0x30] sm:$0xf]  ;;  %v148_v12 = vld [vmem:[%s259_s0 + $0x2c] sm:$0xf] }
   0x7   :  { %59 = vst [vmem:[#allocation0 + $0x10] sm:$0xf] %v157_v5  ;;  %v149_v13 = vld [vmem:[%s259_s0 + $0x28] sm:$0xf]  ;;  %v150_v15 = vld [vmem:[%s259_s0 + $0x24] sm:$0xf] }
   0x8   :  { %63 = vst [vmem:[#allocation0 + $0x8] sm:$0xf] %v158_v6  ;;  %v151_v17 = vld [vmem:[%s259_s0 + $0x20] sm:$0xf]  ;;  %s166_s0 = smov 48   ;;  %vm131_vm4 = vcmask 261248  }
   0x9   :  { %65 = vst [vmem:[#allocation0] sm:$0xf] %v64_v7 }
   0xa   :  { %7 = vst [vmem:[#allocation0 + $0x78] sm:$0xf] %v144_v8 }
   0xb   :  { %11 = vst [vmem:[#allocation0 + $0x70] sm:$0xf] %v145_v9 }
   0xc   :  { %v84_v14 = vld [vmem:[#allocation0 + $0x3] ss:$8 sm:$0xf0]   ;;  %15 = vst [vmem:[#allocation0 + $0x68] sm:$0xf] %v146_v10 }
   0xd   :  { %v105_v16 = vld [vmem:[#allocation0 + $0x2] ss:$8 sm:$0xf0]   ;;  %19 = vst [vmem:[#allocation0 + $0x60] sm:$0xf] %v147_v11 }
   0xe   :  { %23 = vst [vmem:[#allocation0 + $0x58] sm:$0xf] %v148_v12  ;;  %v126_v18 = vld [vmem:[#allocation0 + $0x1] ss:$8 sm:$0xf0]  }
   0xf   :  { %27 = vst [vmem:[#allocation0 + $0x50] sm:$0xf] %v149_v13  ;;  %v67_v35 = vld [vmem:[#allocation0] ss:$8 sm:$0xf0]  }
  0x10   :  { %v82_v19 = vld [vmem:[#allocation0 + $0x3] ss:$8 sm:$0xf]   ;;  %v103_v20 = vld [vmem:[#allocation0 + $0x2] ss:$8 sm:$0xf]  }
  0x11   :  { %v86_v21 = vsel %vm68_vm0, %v84_v14, %v82_v19  ;;  %v107_v22 = vsel %vm68_vm0, %v105_v16, %v103_v20  ;;  %v124_v23 = vld [vmem:[#allocation0 + $0x1] ss:$8 sm:$0xf]   ;;  %31 = vst [vmem:[#allocation0 + $0x48] sm:$0xf] %v150_v15 }
  0x12   :  { %87 = vrot.lane.b32.xlu0 %v86_v21, %s166_s0  ;;  %108 = vrot.lane.b32.xlu1 %v107_v22, %s167_s9  ;;  %v128_v24 = vsel %vm68_vm0, %v126_v18, %v124_v23  ;;  %35 = vst [vmem:[#allocation0 + $0x40] sm:$0xf] %v151_v17  ;;  %v66_v34 = vld [vmem:[#allocation0] ss:$8 sm:$0xf]  }
  0x13   :  { %129 = vrot.lane.b32.xlu2 %v128_v24, %s168_s10  ;;  %v69_v36 = vsel %vm68_vm0, %v67_v35, %v66_v34 }
  0x14   :  { %v94_v25 = vld [vmem:[#allocation0 + $0x43] ss:$8 sm:$0xf0]   ;;  %v115_v26 = vld [vmem:[#allocation0 + $0x42] ss:$8 sm:$0xf0]  }
  0x15   :  { %v136_v27 = vld [vmem:[#allocation0 + $0x41] ss:$8 sm:$0xf0]   ;;  %71 = vst.msk [vmem:[%s260_s1] sm:$0xff] %vm70_vm1, %v69_v36  }
  0x16   :  { %v75_v38 = vld [vmem:[#allocation0 + $0x40] ss:$8 sm:$0xf0]  }
  0x19   :  { %v92_v28 = vld [vmem:[#allocation0 + $0x43] ss:$8 sm:$0xf]   ;;  %v113_v29 = vld [vmem:[#allocation0 + $0x42] ss:$8 sm:$0xf]  }
  0x1a   :  { %v96_v30 = vsel %vm68_vm0, %v94_v25, %v92_v28  ;;  %v117_v31 = vsel %vm68_vm0, %v115_v26, %v113_v29  ;;  %v134_v32 = vld [vmem:[#allocation0 + $0x41] ss:$8 sm:$0xf]   ;;  %v73_v37 = vld [vmem:[#allocation0 + $0x40] ss:$8 sm:$0xf]  }
  0x1b   :  { %97 = vrot.lane.b32.xlu0 %v96_v30, %s166_s0  ;;  %118 = vrot.lane.b32.xlu1 %v117_v31, %s167_s9  ;;  %v138_v33 = vsel %vm68_vm0, %v136_v27, %v134_v32  ;;  %v77_v40 = vsel %vm68_vm0, %v75_v38, %v73_v37 }
  0x1c   :  { %139 = vrot.lane.b32.xlu2 %v138_v33, %s168_s10  ;;  %159 = vst.msk [vmem:[%s260_s1 + $0x8] sm:$0xff] %vm70_vm1, %v77_v40  }
  0x6d   :  { %v130_v39 = vpop.permute.xlu2 %129  }
  0x76   :  { %v140_v41 = vpop.permute.xlu2 %139  }
  0x84   :  { %v88_v42 = vpop.permute.xlu0 %87   ;;  %v109_v43 = vpop.permute.xlu1 %108  }
  0x85   :  { %90 = vst.msk [vmem:[%s260_s1] sm:$0xff] %vm89_vm2, %v88_v42  }
  0x86   :  { %111 = vst.msk [vmem:[%s260_s1] sm:$0xff] %vm110_vm3, %v109_v43  }
  0x87   :  { %132 = vst.msk [vmem:[%s260_s1] sm:$0xff] %vm131_vm4, %v130_v39  }
  0x8d   :  { %v98_v44 = vpop.permute.xlu0 %97   ;;  %v119_v45 = vpop.permute.xlu1 %118  }
  0x8e   :  { %160 = vst.msk [vmem:[%s260_s1 + $0x8] sm:$0xff] %vm89_vm2, %v98_v44  }
  0x8f   :  { %161 = vst.msk [vmem:[%s260_s1 + $0x8] sm:$0xff] %vm110_vm3, %v119_v45  }
  0x90   :  { %162 = vst.msk [vmem:[%s260_s1 + $0x8] sm:$0xff] %vm131_vm4, %v140_v41  }

// kernel: forward.1
= control target key start
LH: loop header
LB: loop body
LE: loop exit
PB: predicated region body
PF: predicated region fallthrough
CT: control target
= control target key end

     0   :  { %14 = vsyncpa [#allocation4], 0  ;;  %s1524_s30 = smov 0   ;;  %s1783_s0 = inlined_call_operand.vmem [shape: f32[16,64], index: 0, kind: input, shape index: {}]   ;;  %s1784_s1 = inlined_call_operand.vmem [shape: f32[16,64], index: 1, kind: input, shape index: {}]   ;;  %s1785_s2 = inlined_call_operand.vmem [shape: f32[16,64], index: 2, kind: input, shape index: {}]   ;;  %s1786_s3 = inlined_call_operand.vmem [shape: f32[16,32], index: 3, kind: input, shape index: {}]   ;;  %s1787_s4 = inlined_call_operand.vmem [shape: f32[16,32], index: 4, kind: input, shape index: {}]   ;;  %s1788_s5 = inlined_call_operand.vmem [shape: f32[2,64,224], index: 5, kind: input, shape index: {}]   ;;  %s1789_s6 = inlined_call_operand.vmem [shape: f32[2,64,64], index: 6, kind: input, shape index: {}]   ;;  %s1790_s7 = inlined_call_operand.vmem [shape: f32[2,64,256], index: 7, kind: input, shape index: {}]   ;;  %s1791_s8 = inlined_call_operand.vmem [shape: f32[2,128,64], index: 8, kind: input, shape index: {}]   ;;  %s1792_s9 = inlined_call_operand.hbm [shape: f32[16,64], index: 9, kind: output, shape index: {}]  }
   0x1 LB: > { %s1530_s10 = sadd.s32 4294967295, %s1460_s30   ;;  %p1279_p0 = scmp.ge.s32.totalorder %s1460_s30, 1  ;;  %s1460_s30 = sphi %s1524_s30, %s20_s30  }
   0x2   : > { %p313_p1 = scmp.lt.s32.totalorder %s1460_s30, 3 }
   0x4   : > { %p314_p2 = pnand %p1279_p0, %p313_p1 }
   0x5   : > { %p359_p3 = scmp.lt.s32.totalorder (!%p314_p2), %s1530_s10, 1  ;;  %p1288_p4 = scmp.ne.s32.totalorder (!%p314_p2), %s1530_s10, 0 }
   0x6   : > { %317 = sbr.rel (%p314_p2) target bundleno = 1828 (0x724), region = 56 }
   0xb   : > { %s360_s11 = scalar_select %p359_p3, %s1530_s10, 1 }
   0xc   : > { %382 = sbr.rel (%p1288_p4) target bundleno = 20 (0x14), region = 60 }
   0xd   : > { %s1330_s12 = sshll.u32 %s360_s11, 7  ;;  %s1331_s13 = sshll.u32 %s360_s11, 6 }
   0xe   : > { %s1539_s16 = scalar_lea.vmem %s1788_s5, %s1330_s12  ;;  %s1544_s19 = scalar_lea.vmem %s1789_s6, %s1331_s13 }
   0xf   : > { %s1549_s22 = scalar_lea.vmem %s1790_s7, %s1330_s12  ;;  %s1554_s25 = scalar_lea.vmem %s1791_s8, %s1330_s12 }
  0x11   : > { %v383_v0 = vld [vmem:[%s1783_s0] sm:$0xff]  ;;  %vm385_vm0 = vcmask 523264   ;;  %v384_v1 = vld [vmem:[%s1783_s0 + $0x8] sm:$0xff] }
  0x12   : > { %386 = vst.msk [vmem:[#allocation2] sm:$0xff] %vm385_vm0, %v383_v0 }
  0x13   : > { %387 = vst.msk [vmem:[#allocation2 + $0x8] sm:$0xff] %vm385_vm0, %v384_v1 }
  0x14 PF: > { %vm392_vm1 = vcmask 523264   ;;  %v1462_v8 = vmov 64.0   ;;  %v446_v9 = vld [vmem:[%s1539_s16 + $0x70] sm:$0xff]  ;;  %v447_v10 = vld [vmem:[%s1539_s16 + $0x78] sm:$0xff]  ;;  %v444_v12 = vld [vmem:[%s1539_s16 + $0x60] sm:$0xff]  ;;  %s1463_s13 = smov 32  }
  0x15   : > { %1372 = vrcp.f32 %v1462_v8  ;;  %462 = vmatpush.msra.mxu0 %v446_v9  ;;  %485 = vmatpush.msra.mxu1 %v447_v10  ;;  %v445_v13 = vld [vmem:[%s1539_s16 + $0x68] sm:$0xff]  ;;  %v442_v14 = vld [vmem:[%s1539_s16 + $0x50] sm:$0xff]  ;;  %v443_v15 = vld [vmem:[%s1539_s16 + $0x58] sm:$0xff]  ;;  %s1464_s18 = smov 64   ;;  %s1465_s23 = smov 96   ;;  %vm571_vm9 = vcmask 130048  }
  0x16   : > { %v440_v17 = vld [vmem:[%s1539_s16 + $0x40] sm:$0xff]  ;;  %v441_v18 = vld [vmem:[%s1539_s16 + $0x48] sm:$0xff]  ;;  %v438_v19 = vld [vmem:[%s1539_s16 + $0x30] sm:$0xff]  ;;  %s1466_s27 = smov 112   ;;  %s1469_s17 = smov 48   ;;  %vm952_vm0 = vcmask 261120  }
  0x17   : > { %463 = vmatpush.msra.mxu0 %v444_v12  ;;  %486 = vmatpush.msra.mxu1 %v445_v13  ;;  %v439_v20 = vld [vmem:[%s1539_s16 + $0x38] sm:$0xff]  ;;  %v436_v22 = vld [vmem:[%s1539_s16 + $0x20] sm:$0xff]  ;;  %v437_v23 = vld [vmem:[%s1539_s16 + $0x28] sm:$0xff]  ;;  %p1325_p5 = scmp.ne.s32.totalorder %s1530_s10, 1 }
  0x18   : > { %v434_v24 = vld [vmem:[%s1539_s16 + $0x10] sm:$0xff]  ;;  %v435_v25 = vld [vmem:[%s1539_s16 + $0x18] sm:$0xff]  ;;  %v432_v27 = vld [vmem:[%s1539_s16] sm:$0xff] }
  0x19   : > { %v1563_v2 = vld [vmem:[#allocation2] sm:$0xff]  ;;  %464 = vmatpush.msra.mxu0 %v442_v14  ;;  %487 = vmatpush.msra.mxu1 %v443_v15  ;;  %v433_v28 = vld [vmem:[%s1539_s16 + $0x8] sm:$0xff]  ;;  %s1467_s16 = smov 80  }
  0x1a   : > { %v390_v3 = vmul.f32 %v1563_v2, %v1563_v2  ;;  %v1567_v4 = vld [vmem:[#allocation2 + $0x8] sm:$0xff]  ;;  %v530_v34 = vld [vmem:[%s1787_s4] sm:$0xff] }
  0x1b   : > { %v391_v6 = vmul.f32 %v1567_v4, %v1567_v4  ;;  %v1373_v11 = vpop.eup %1372  ;;  %465 = vmatpush.msra.mxu0 %v440_v17  ;;  %488 = vmatpush.msra.mxu1 %v441_v18  ;;  %v531_v30 = vld [vmem:[%s1787_s4 + $0x8] sm:$0xff]  ;;  %v504_v35 = vld [vmem:[%s1785_s2] sm:$0xff] }
  0x1c   : > { %v393_v5 = vsel %vm392_vm1, %v390_v3, 0.0  ;;  %v400_v16 = vmul.f32 64.0, %v1373_v11  ;;  %vm404_vm2 = vweird.f32 %v1373_v11  ;;  %536 = vrot.lane.b32.xlu1 %v531_v30, %s1463_s13  ;;  %508 = vrot.lane.b32.xlu2 %v504_v35, %s1464_s18  ;;  %v505_v37 = vld [vmem:[%s1785_s2 + $0x8] sm:$0xff]  ;;  %v500_v8 = vld [vmem:[%s1784_s1] sm:$0xff] }
  0x1d   : > { %394 = vadd.xlane.f32.xlu0 %v393_v5  ;;  %v396_v7 = vsel %vm392_vm1, %v391_v6, 0.0  ;;  %466 = vmatpush.msra.mxu0 %v438_v19  ;;  %v501_v13 = vld [vmem:[%s1784_s1 + $0x8] sm:$0xff]  ;;  %v526_v17 = vld [vmem:[%s1786_s3] sm:$0xff] }
  0x1e   : > { %v401_v21 = vsub.f32 1.0, %v400_v16  ;;  %489 = vmatpush.msra.mxu1 %v439_v20  ;;  %v527_v14 = vld [vmem:[%s1786_s3 + $0x8] sm:$0xff] }
  0x1f   : > { %467 = vmatpush.msra.mxu0 %v436_v22 }
  0x20   : > { %490 = vmatpush.msra.mxu1 %v437_v23  ;;  %v402_v26 = vmul.f32 %v1373_v11, %v401_v21 }
  0x21   : > { %468 = vmatpush.msra.mxu0 %v434_v24 }
  0x22   : > { %491 = vmatpush.msra.mxu1 %v435_v25  ;;  %v403_v29 = vadd.f32 %v1373_v11, %v402_v26 }
  0x23   : > { %469 = vmatpush.msra.mxu0 %v432_v27 }
  0x24   : > { %492 = vmatpush.msra.mxu1 %v433_v28  ;;  %v1593_v31 = vsel %vm404_vm2, %v1373_v11, %v403_v29  ;;  %534 = vrot.lane.b32.xlu1 %v530_v34, %s1463_s13  ;;  %v552_v28 = vlaneseq  ;;  %vm955_vm2 = vcmask 392192  }
  0x25   : > { %397 = vadd.xlane.f32.xlu0 %v396_v7  ;;  %510 = vrot.lane.b32.xlu2 %v505_v37, %s1464_s18 }
  0x26   : > { %v553_v29 = vshrl.u32 %v552_v28, 7 }
  0x28   : > { %v557_v34 = vshra.s32 %v553_v29, 3 }
  0x76   : > { %v509_v58 = vpop.permute.xlu2 %508 }
  0x7f   : > { %v511_v0 = vpop.permute.xlu2 %510 }
  0x8e   : > { %v537_v57 = vpop.permute.xlu1 %536 }
  0x90   : > { %v395_v32 = vpop.xlane.xlu0 %394 }
  0x91   : > { %v406_v33 = vmul.f32 %v1593_v31, %v395_v32  ;;  %v556_v32 = vand.u32 127, %v552_v28 }
  0x93   : > { %v408_v36 = vadd.f32 1e-05, %v406_v33  ;;  %v554_v33 = vadd.s32 8, %v553_v29  ;;  %v559_v35 = vshra.s32 %v556_v32, 3  ;;  %v562_v37 = vand.u32 7, %v556_v32 }
  0x95   : > { %1374 = vrsqrt.f32 %v408_v36  ;;  %vm416_vm4 = vweird.f32 %v408_v36  ;;  %vm563_vm10 = vcmp.eq.s32.totalorder %v557_v34, %v559_v35 }
  0x96   : > { %v535_v59 = vpop.permute.xlu1 %534 }
  0x98   : > { %v398_v38 = vpop.xlane.xlu0 %397 }
  0x99   : > { %v407_v39 = vmul.f32 %v1593_v31, %v398_v38  ;;  %v558_v38 = vshra.s32 %v554_v33, 3 }
  0x9b   : > { %v1375_v40 = vpop.eup %1374  ;;  %v409_v41 = vadd.f32 1e-05, %v407_v39  ;;  %v561_v39 = vand.u32 7, %v554_v33  ;;  %vm564_vm12 = vcmp.eq.s32.totalorder %v558_v38, %v559_v35 }
  0x9c   : > { %v411_v42 = vmul.f32 %v1375_v40, %v408_v36  ;;  %vm417_vm3 = vweird.f32 %v1375_v40  ;;  %v560_v36 = vand.u32 7, %v553_v29 }
  0x9d   : > { %1376 = vrsqrt.f32 %v409_v41  ;;  %vm418_vm5 = vmor %vm416_vm4, %vm417_vm3  ;;  %vm426_vm7 = vweird.f32 %v409_v41  ;;  %vm566_vm13 = vcmp.le.s32.totalorder %v562_v37, %v561_v39 }
  0x9e   : > { %v412_v43 = vmul.f32 %v1375_v40, %v411_v42  ;;  %vm565_vm11 = vcmp.le.s32.totalorder %v562_v37, %v560_v36  ;;  %vm568_vm15 = vmand %vm564_vm12, %vm566_vm13 }
  0x9f   : > { %vm567_vm14 = vmand %vm563_vm10, %vm565_vm11 }
  0xa0   : > { %v413_v44 = vmul.f32 0.5, %v412_v43 }
  0xa2   : > { %v414_v45 = vsub.f32 1.5, %v413_v44 }
  0xa3   : > { %v1377_v46 = vpop.eup %1376 }
  0xa4   : > { %v421_v47 = vmul.f32 %v1377_v46, %v409_v41  ;;  %v415_v48 = vmul.f32 %v1375_v40, %v414_v45  ;;  %vm427_vm6 = vweird.f32 %v1377_v46  ;;  %v1468_v41 = vmov -1e+30  }
  0xa5   : > { %vm428_vm8 = vmor %vm426_vm7, %vm427_vm6  ;;  %v569_v42 = vsel %vm567_vm14, 0.0, %v1468_v41  ;;  %v570_v43 = vsel %vm568_vm15, 0.0, %v1468_v41 }
  0xa6   : > { %v422_v49 = vmul.f32 %v1377_v46, %v421_v47  ;;  %v419_v50 = vsel %vm418_vm5, %v1375_v40, %v415_v48 }
  0xa7   : > { %v430_v51 = vmul.f32 %v419_v50, %v1563_v2 }
  0xa8   : > { %v423_v52 = vmul.f32 0.5, %v422_v49 }
  0xa9   : > { %1289 = vmatmul.msk.f32.vlgmr.msra.gmra.mxu0 %vm392_vm1, %v430_v51  ;;  %1291 = vmatmul.msk.f32.vlgmr.msra.gmra.mxu1 %vm392_vm1, %v430_v51 }
  0xaa   : > { %v424_v53 = vsub.f32 1.5, %v423_v52 }
  0xac   : > { %v425_v54 = vmul.f32 %v1377_v46, %v424_v53 }
  0xae   : > { %v429_v55 = vsel %vm428_vm8, %v1377_v46, %v425_v54 }
  0xaf   : > { %v431_v56 = vmul.f32 %v429_v55, %v1567_v4 }
  0xb1   : > { %1290 = vmatmul.msk.f32.gmra.mxu0 %vm392_vm1, %v431_v56  ;;  %1292 = vmatmul.msk.f32.gmra.mxu1 %vm392_vm1, %v431_v56 }
 0x126   : > { %v471_v60 = vpop.f32.mrf.mxu0  ;;  %v494_v61 = vpop.f32.mrf.mxu1 }
 0x127   : > { %v514_v62 = vmul.f32 %v509_v58, %v471_v60  ;;  %v540_v63 = vmul.f32 %v535_v59, %v494_v61  ;;  %v502_v9 = vmul.f32 %v500_v8, %v471_v60  ;;  %v528_v22 = vmul.f32 %v526_v17, %v494_v61 }
 0x129   : > { %544 = vrot.lane.b32.xlu1 %v540_v63, %s1465_s23  ;;  %518 = vrot.lane.b32.xlu2 %v514_v62, %s1464_s18 }
 0x12e   : > { %v474_v1 = vpop.f32.mrf.mxu0  ;;  %v497_v3 = vpop.f32.mrf.mxu1 }
 0x12f   : > { %v515_v5 = vmul.f32 %v511_v0, %v474_v1  ;;  %v541_v6 = vmul.f32 %v537_v57, %v497_v3  ;;  %v1619_v7 = vpack.i.bf16 %v494_v61, %v497_v3  ;;  %v503_v15 = vmul.f32 %v501_v13, %v474_v1 }
 0x130   : > { %v529_v16 = vmul.f32 %v527_v14, %v497_v3 }
 0x131   : > { %546 = vrot.lane.b32.xlu0 %v541_v6, %s1465_s23  ;;  %520 = vrot.lane.b32.xlu1 %v515_v5, %s1464_s18 }
 0x139   : > { %1363 = vrot.lane.b32.xlu0 %v1619_v7, %s1464_s18  ;;  %s1470_s18 = smov 16  }
 0x183   : > { %v519_v10 = vpop.permute.xlu2 %518 }
 0x184   : > { %v524_v11 = vadd.f32 %v519_v10, %v502_v9 }
 0x186   : > { %666 = vrot.lane.b32.xlu0 %v524_v11, %s1466_s27 }
 0x19b   : > { %v545_v12 = vpop.permute.xlu1 %544 }
 0x19c   : > { %v550_v23 = vadd.f32 %v545_v12, %v528_v22 }
 0x1a3   : > { %v547_v18 = vpop.permute.xlu0 %546  ;;  %v521_v19 = vpop.permute.xlu1 %520 }
 0x1a4   : > { %v551_v20 = vadd.f32 %v547_v18, %v529_v16  ;;  %v525_v21 = vadd.f32 %v521_v19, %v503_v15 }
 0x1a6   : > { %1293 = vmatpush.xpose.msk.msrb.mxu0 %vm571_vm9, %v551_v20  ;;  %1334 = vmatpush.xpose.msk.msrb.mxu1 %vm571_vm9, %v551_v20 }
 0x1a7   : > { %668 = vrot.lane.b32.xlu0 %v525_v21, %s1466_s27 }
 0x1aa   : > { %1294 = vmatpush.xpose.msk.msrb.mxu0 %vm571_vm9, %v550_v23  ;;  %1335 = vmatpush.xpose.msk.msrb.mxu1 %vm571_vm9, %v550_v23 }
 0x1ab   : > { %v1364_v24 = vpop.permute.xlu0 %1363 }
 0x1ac   : > { %v1365_v25 = vunpack.i.l.bf16 %v1364_v24  ;;  %v1366_v26 = vunpack.i.h.bf16 %v1364_v24 }
 0x1ad   : > { %1295 = vmatmul.msk.f32.vlgmr.msrb.gmra.mxu0 %vm571_vm9, %v524_v11  ;;  %1296 = vmatmul.msk.f32.vlgmr.msrb.gmra.mxu1 %vm571_vm9, %v525_v21 }
 0x1ae   : > { %653 = vmatpush.msra.mxu3 %v1365_v25  ;;  %735 = vmatpush.msra.mxu2 %v1365_v25 }
 0x1af   : > { %754 = vrot.lane.b32.xlu0 %v551_v20, %s1466_s27 }
 0x1b0   : > { %654 = vmatpush.msra.mxu3 %v1366_v26  ;;  %736 = vmatpush.msra.mxu2 %v1366_v26 }
 0x1b2   : > { %1299 = vmatpush.xpose.msk.msrb.mxu3 %vm571_vm9, %v551_v20 }
 0x1b6   : > { %1300 = vmatpush.xpose.msk.msrb.mxu3 %vm571_vm9, %v550_v23 }
 0x1b7   : > { %844 = vrot.lane.b32.xlu0 %v524_v11, %s1467_s16 }
 0x1bf   : > { %748 = vrot.lane.b32.xlu0 %v524_v11, %s1465_s23 }
 0x1c7   : > { %750 = vrot.lane.b32.xlu0 %v525_v21, %s1465_s23 }
 0x1f8   : > { %v667_v27 = vpop.permute.xlu0 %666 }
 0x219   : > { %v669_v30 = vpop.permute.xlu0 %668 }
 0x221   : > { %v755_v40 = vpop.permute.xlu0 %754 }
 0x222   : > { %1305 = vmatpush.xpose.msk.msra.mxu0 %vm571_vm9, %v755_v40 }
 0x229   : > { %v845_v50 = vpop.permute.xlu0 %844 }
 0x22a   : > { %v601_v44 = vpop.f32.mrf.mxu0  ;;  %v604_v45 = vpop.f32.mrf.mxu1 }
 0x22b   : > { %v602_v46 = vadd.f32 %v601_v44, %v569_v42  ;;  %v605_v47 = vadd.f32 %v604_v45, %v570_v43 }
 0x22d   : > { %v607_v48 = vsel %vm571_vm9, %v602_v46, -inf  ;;  %v610_v49 = vsel %vm571_vm9, %v605_v47, -inf }
 0x22e   : > { %608 = vmax.xlane.f32.xlu2 %v607_v48  ;;  %611 = vmax.xlane.f32.xlu1 %v610_v49 }
 0x231   : > { %v749_v57 = vpop.permute.xlu0 %748 }
 0x239   : > { %v751_v61 = vpop.permute.xlu0 %750 }
 0x246   : > { %752 = vrot.lane.b32.xlu2 %v550_v23, %s1466_s27 }
 0x247   : > { %846 = vrot.lane.b32.xlu1 %v525_v21, %s1467_s16 }
 0x2a1   : > { %v609_v51 = vpop.xlane.xlu2 %608  ;;  %v612_v53 = vpop.xlane.xlu1 %611 }
 0x2a2   : > { %v613_v52 = vsub.f32 %v602_v46, %v609_v51  ;;  %v614_v55 = vsub.f32 %v605_v47, %v612_v53 }
 0x2a4   : > { %v615_v54 = vmul.f32 1.442695, %v613_v52  ;;  %v617_v58 = vmul.f32 1.442695, %v614_v55 }
 0x2a6   : > { %1378 = vpow2.f32 %v615_v54 }
 0x2a7   : > { %1380 = vpow2.f32 %v617_v58 }
 0x2a9   : > { %v753_v56 = vpop.permute.xlu2 %752 }
 0x2aa   : > { %1306 = vmatpush.xpose.msk.msra.mxu0 %vm571_vm9, %v753_v56 }
 0x2ac   : > { %v1655_v59 = vpop.eup %1378 }
 0x2ad   : > { %1297 = vmatmul.msk.f32.vlgmr.msra.gmra.mxu3 %vm571_vm9, %v1655_v59  ;;  %1307 = vmatmul.msk.f32.vlgmr.msra.gmra.mxu0 %vm571_vm9, %v749_v57  ;;  %v1662_v60 = vpop.eup %1380  ;;  %v619_v52 = vsel %vm571_vm9, %v1655_v59, 0.0 }
 0x2ae   : > { %1311 = vmatpush.xpose.msk.msra.mxu3 %vm571_vm9, %v755_v40 }
 0x2b2   : > { %1312 = vmatpush.xpose.msk.msra.mxu3 %vm571_vm9, %v753_v56  ;;  %v622_v56 = vsel %vm571_vm9, %v1662_v60, 0.0 }
 0x2b5   : > { %1298 = vmatmul.msk.f32.gmra.mxu3 %vm571_vm9, %v1662_v60  ;;  %1308 = vmatmul.msk.f32.gmra.mxu0 %vm571_vm9, %v751_v61 }
 0x2b9   : > { %v847_v62 = vpop.permute.xlu1 %846 }
 0x2bd   : > { %1301 = vmatmul.msk.f32.vlgmr.msrb.gmra.mxu3 %vm571_vm9, %v667_v27 }
 0x2c5   : > { %1302 = vmatmul.msk.f32.gmra.mxu3 %vm571_vm9, %v669_v30 }
 0x2cd   : > { %1313 = vmatmul.msk.f32.vlgmr.msra.gmra.mxu3 %vm571_vm9, %v845_v50 }
 0x2d5   : > { %1314 = vmatmul.msk.f32.gmra.mxu3 %vm571_vm9, %v847_v62 }
 0x32a   : > { %v781_v6 = vpop.f32.mrf.mxu0 }
 0x32b   : > { %v782_v8 = vadd.f32 %v781_v6, %v569_v42 }
 0x32d   : > { %v787_v12 = vsel %vm571_vm9, %v782_v8, -inf }
 0x330   : > { %v1671_v63 = vpop.f32.mrf.mxu3 }
 0x332   : > { %v784_v16 = vpop.f32.mrf.mxu0 }
 0x333   : > { %v785_v17 = vadd.f32 %v784_v16, %v570_v43 }
 0x335   : > { %v790_v20 = vsel %vm571_vm9, %v785_v17, -inf }
 0x338   : > { %v1673_v0 = vpop.f32.mrf.mxu3 }
 0x340   : > { %v691_v1 = vpop.f32.mrf.mxu3 }
 0x341   : > { %v692_v3 = vadd.f32 %v691_v1, %v569_v42 }
 0x343   : > { %v697_v5 = vsel %vm571_vm9, %v692_v3, -inf }
 0x344   : > { %698 = vmax.xlane.f32.xlu2 %v697_v5 }
 0x348   : > { %v694_v9 = vpop.f32.mrf.mxu3 }
 0x349   : > { %v695_v10 = vadd.f32 %v694_v9, %v570_v43 }
 0x34b   : > { %v700_v11 = vsel %vm571_vm9, %v695_v10, -inf }
 0x34c   : > { %701 = vmax.xlane.f32.xlu0 %v700_v11  ;;  %788 = vmax.xlane.f32.xlu2 %v787_v12 }
 0x350   : > { %v869_v13 = vpop.f32.mrf.mxu3 }
 0x351   : > { %v870_v14 = vadd.f32 %v869_v13, %v569_v42 }
 0x353   : > { %v875_v15 = vsel %vm571_vm9, %v870_v14, -inf }
 0x354   : > { %876 = vmax.xlane.f32.xlu1 %v875_v15 }
 0x358   : > { %v872_v18 = vpop.f32.mrf.mxu3 }
 0x359   : > { %v873_v19 = vadd.f32 %v872_v18, %v570_v43 }
 0x35b   : > { %v878_v21 = vsel %vm571_vm9, %v873_v19, -inf }
 0x35c   : > { %791 = vmax.xlane.f32.xlu1 %v790_v20  ;;  %879 = vmax.xlane.f32.xlu0 %v878_v21 }
 0x364   : > { %1368 = vrot.lane.b32.xlu2 %v1619_v7, %s1469_s17 }
 0x3b7   : > { %v699_v22 = vpop.xlane.xlu2 %698 }
 0x3b8   : > { %v703_v23 = vsub.f32 %v692_v3, %v699_v22  ;;  %v965_v22 = vld [vmem:[%s1544_s19 + $0x38] sm:$0xff] }
 0x3b9   : > { %980 = vmatpush.msrb.mxu0 %v965_v22 }
 0x3ba   : > { %v705_v24 = vmul.f32 1.442695, %v703_v23  ;;  %v964_v23 = vld [vmem:[%s1544_s19 + $0x30] sm:$0xff] }
 0x3bb   : > { %981 = vmatpush.msrb.mxu0 %v964_v23 }
 0x3bc   : > { %1382 = vpow2.f32 %v705_v24  ;;  %v963_v24 = vld [vmem:[%s1544_s19 + $0x28] sm:$0xff] }
 0x3bd   : > { %982 = vmatpush.msrb.mxu0 %v963_v24 }
 0x3bf   : > { %v702_v25 = vpop.xlane.xlu0 %701  ;;  %v789_v26 = vpop.xlane.xlu2 %788 }
 0x3c0   : > { %v704_v27 = vsub.f32 %v695_v10, %v702_v25  ;;  %v793_v28 = vsub.f32 %v782_v8, %v789_v26  ;;  %v962_v25 = vld [vmem:[%s1544_s19 + $0x20] sm:$0xff]  ;;  %v961_v26 = vld [vmem:[%s1544_s19 + $0x18] sm:$0xff] }
 0x3c1   : > { %983 = vmatpush.msrb.mxu0 %v962_v25 }
 0x3c2   : > { %v1383_v29 = vpop.eup %1382  ;;  %v707_v30 = vmul.f32 1.442695, %v704_v27  ;;  %v795_v32 = vmul.f32 1.442695, %v793_v28  ;;  %v960_v27 = vld [vmem:[%s1544_s19 + $0x10] sm:$0xff]  ;;  %v959_v28 = vld [vmem:[%s1544_s19 + $0x8] sm:$0xff] }
 0x3c3   : > { %1303 = vmatmul.msk.f32.vlgmr.msra.gmra.mxu2 %vm571_vm9, %v1383_v29  ;;  %v709_v54 = vsel %vm571_vm9, %v1383_v29, 0.0  ;;  %984 = vmatpush.msrb.mxu0 %v961_v26  ;;  %v958_v29 = vld [vmem:[%s1544_s19] sm:$0xff] }
 0x3c4   : > { %1384 = vpow2.f32 %v707_v30 }
 0x3c5   : > { %1386 = vpow2.f32 %v795_v32  ;;  %985 = vmatpush.msrb.mxu0 %v960_v27 }
 0x3c7   : > { %v1369_v33 = vpop.permute.xlu2 %1368  ;;  %v877_v34 = vpop.xlane.xlu1 %876  ;;  %986 = vmatpush.msrb.mxu0 %v959_v28 }
 0x3c8   : > { %v1370_v35 = vunpack.i.l.bf16 %v1369_v33  ;;  %v881_v36 = vsub.f32 %v870_v14, %v877_v34  ;;  %v1371_v37 = vunpack.i.h.bf16 %v1369_v33 }
 0x3c9   : > { %987 = vmatpush.msrb.mxu0 %v958_v29 }
 0x3ca   : > { %v1385_v7 = vpop.eup %1384  ;;  %v883_v38 = vmul.f32 1.442695, %v881_v36  ;;  %831 = vmatpush.msra.mxu1 %v1370_v35  ;;  %913 = vmatpush.msrb.mxu2 %v1370_v35 }
 0x3cb   : > { %v1387_v39 = vpop.eup %1386  ;;  %1304 = vmatmul.msk.f32.gmra.mxu2 %vm571_vm9, %v1385_v7  ;;  %v712_v48 = vsel %vm571_vm9, %v1385_v7, 0.0 }
 0x3cc   : > { %1388 = vpow2.f32 %v883_v38  ;;  %v799_v40 = vsel %vm571_vm9, %v1387_v39, 0.0  ;;  %832 = vmatpush.msra.mxu1 %v1371_v37  ;;  %914 = vmatpush.msrb.mxu2 %v1371_v37 }
 0x3cd   : > { %800 = vadd.xlane.f32.xlu1 %v799_v40  ;;  %1309 = vmatmul.msk.f32.vlgmr.msra.gmra.mxu1 %vm571_vm9, %v1387_v39 }
 0x3cf   : > { %v880_v41 = vpop.xlane.xlu0 %879  ;;  %v792_v42 = vpop.xlane.xlu1 %791 }
 0x3d0   : > { %v882_v43 = vsub.f32 %v873_v19, %v880_v41  ;;  %v794_v44 = vsub.f32 %v785_v17, %v792_v42 }
 0x3d2   : > { %v1389_v45 = vpop.eup %1388  ;;  %v885_v46 = vmul.f32 1.442695, %v882_v43  ;;  %v797_v47 = vmul.f32 1.442695, %v794_v44 }
 0x3d3   : > { %1315 = vmatmul.msk.f32.vlgmr.msrb.gmra.mxu2 %vm571_vm9, %v1389_v45  ;;  %v887_v55 = vsel %vm571_vm9, %v1389_v45, 0.0 }
 0x3d4   : > { %1390 = vpow2.f32 %v885_v46 }
 0x3d5   : > { %1392 = vpow2.f32 %v797_v47  ;;  %713 = vadd.xlane.f32.xlu1 %v712_v48 }
 0x3da   : > { %v1391_v49 = vpop.eup %1390 }
 0x3db   : > { %v1393_v50 = vpop.eup %1392  ;;  %1316 = vmatmul.msk.f32.gmra.mxu2 %vm571_vm9, %v1391_v49  ;;  %v890_v51 = vsel %vm571_vm9, %v1391_v49, 0.0 }
 0x3dc   : > { %1310 = vmatmul.msk.f32.gmra.mxu1 %vm571_vm9, %v1393_v50  ;;  %891 = vadd.xlane.f32.xlu2 %v890_v51  ;;  %v802_v53 = vsel %vm571_vm9, %v1393_v50, 0.0 }
 0x3dd   : > { %620 = vadd.xlane.f32.xlu1 %v619_v52  ;;  %803 = vadd.xlane.f32.xlu0 %v802_v53  ;;  %v1045_v53 = vld [vmem:[%s1549_s22 + $0x70] sm:$0xff] }
 0x3de   : > { %1061 = vmatpush.msrb.mxu1 %v1045_v53 }
 0x3e5   : > { %710 = vadd.xlane.f32.xlu0 %v709_v54  ;;  %v1046_v54 = vld [vmem:[%s1549_s22 + $0x78] sm:$0xff] }
 0x3e6   : > { %1084 = vmatpush.msrb.mxu3 %v1046_v54 }
 0x3ed   : > { %888 = vadd.xlane.f32.xlu0 %v887_v55  ;;  %v1043_v55 = vld [vmem:[%s1549_s22 + $0x60] sm:$0xff] }
 0x3ee   : > { %1062 = vmatpush.msrb.mxu1 %v1043_v55 }
 0x3f5   : > { %623 = vadd.xlane.f32.xlu0 %v622_v56  ;;  %v1044_v56 = vld [vmem:[%s1549_s22 + $0x68] sm:$0xff] }
 0x3f6   : > { %1085 = vmatpush.msrb.mxu3 %v1044_v56 }
 0x440   : > { %v801_v57 = vpop.xlane.xlu1 %800 }
 0x441   : > { %1394 = vrcp.f32 %v801_v57  ;;  %v1042_v57 = vld [vmem:[%s1549_s22 + $0x58] sm:$0xff] }
 0x442   : > { %1086 = vmatpush.msrb.mxu3 %v1042_v57 }
 0x446   : > { %v738_v58 = vpop.f32.mrf.mxu2 }
 0x447   : > { %v1395_v61 = vpop.eup %1394 }
 0x448   : > { %v714_v9 = vpop.xlane.xlu1 %713 }
 0x44a   : > { %v834_v59 = vpop.f32.mrf.mxu1 }
 0x44b   : > { %v842_v62 = vmul.f32 %v1395_v61, %v834_v59  ;;  %v1040_v61 = vld [vmem:[%s1549_s22 + $0x48] sm:$0xff]  ;;  %v1037_v59 = vld [vmem:[%s1549_s22 + $0x30] sm:$0xff] }
 0x44c   : > { %1087 = vmatpush.msrb.mxu3 %v1040_v61 }
 0x44d   : > { %936 = vrot.lane.b32.xlu0 %v842_v62, %s1463_s13  ;;  %v1038_v62 = vld [vmem:[%s1549_s22 + $0x38] sm:$0xff] }
 0x44e   : > { %v741_v1 = vpop.f32.mrf.mxu2  ;;  %1088 = vmatpush.msrb.mxu3 %v1038_v62 }
 0x44f   : > { %v892_v5 = vpop.xlane.xlu2 %891 }
 0x450   : > { %v804_v3 = vpop.xlane.xlu0 %803  ;;  %1396 = vrcp.f32 %v892_v5  ;;  %v621_v30 = vpop.xlane.xlu1 %620  ;;  %v1033_v5 = vld [vmem:[%s1549_s22 + $0x10] sm:$0xff] }
 0x456   : > { %v916_v6 = vpop.f32.mrf.mxu2  ;;  %v1397_v10 = vpop.eup %1396 }
 0x458   : > { %v711_v8 = vpop.xlane.xlu0 %710 }
 0x459   : > { %1398 = vrcp.f32 %v711_v8  ;;  %v837_v19 = vpop.f32.mrf.mxu1  ;;  %v1031_v8 = vld [vmem:[%s1549_s22] sm:$0xff] }
 0x45a   : > { %1400 = vrcp.f32 %v714_v9  ;;  %v1032_v9 = vld [vmem:[%s1549_s22 + $0x8] sm:$0xff] }
 0x45e   : > { %v919_v11 = vpop.f32.mrf.mxu2 }
 0x45f   : > { %v1399_v60 = vpop.eup %1398  ;;  %v925_v12 = vmul.f32 %v1397_v10, %v919_v11 }
 0x460   : > { %v889_v13 = vpop.xlane.xlu0 %888  ;;  %v746_v14 = vmul.f32 %v1399_v60, %v738_v58  ;;  %v1401_v15 = vpop.eup %1400  ;;  %v1039_v58 = vld [vmem:[%s1549_s22 + $0x40] sm:$0xff] }
 0x461   : > { %1402 = vrcp.f32 %v889_v13  ;;  %946 = vrot.lane.b32.xlu2 %v925_v12, %s1469_s17  ;;  %v747_v17 = vmul.f32 %v1401_v15, %v741_v1  ;;  %v1035_v1 = vld [vmem:[%s1549_s22 + $0x20] sm:$0xff] }
 0x462   : > { %928 = vrot.lane.b32.xlu1 %v746_v14, %s1470_s18  ;;  %1404 = vrcp.f32 %v804_v3  ;;  %v1036_v3 = vld [vmem:[%s1549_s22 + $0x28] sm:$0xff] }
 0x463   : > { %1406 = vrcp.f32 %v621_v30  ;;  %1089 = vmatpush.msrb.mxu3 %v1036_v3  ;;  %v1156_v30 = vld [vmem:[%s1554_s25 + $0x78] sm:$0xff] }
 0x464   : > { %1157 = vmatpush.msra.mxu2 %v1156_v30 }
 0x467   : > { %v1403_v16 = vpop.eup %1402 }
 0x468   : > { %v924_v18 = vmul.f32 %v1403_v16, %v916_v6  ;;  %v1405_v20 = vpop.eup %1404  ;;  %v624_v32 = vpop.xlane.xlu0 %623  ;;  %v1034_v6 = vld [vmem:[%s1549_s22 + $0x18] sm:$0xff] }
 0x469   : > { %v843_v21 = vmul.f32 %v1405_v20, %v837_v19  ;;  %v1407_v33 = vpop.eup %1406  ;;  %1408 = vrcp.f32 %v624_v32  ;;  %1090 = vmatpush.msrb.mxu3 %v1034_v6  ;;  %v1155_v32 = vld [vmem:[%s1554_s25 + $0x70] sm:$0xff] }
 0x46a   : > { %944 = vrot.lane.b32.xlu0 %v924_v18, %s1469_s17  ;;  %930 = vrot.lane.b32.xlu1 %v747_v17, %s1470_s18  ;;  %v664_v36 = vmul.f32 %v1407_v33, %v1671_v63  ;;  %v1154_v33 = vld [vmem:[%s1554_s25 + $0x68] sm:$0xff] }
 0x46b   : > { %1091 = vmatpush.msrb.mxu3 %v1032_v9  ;;  %1158 = vmatpush.msra.mxu2 %v1155_v32 }
 0x46d   : > { %1159 = vmatpush.msra.mxu2 %v1154_v33 }
 0x46f   : > { %v1409_v40 = vpop.eup %1408 }
 0x470   : > { %v665_v42 = vmul.f32 %v1409_v40, %v1673_v0  ;;  %v1146_v40 = vld [vmem:[%s1554_s25 + $0x28] sm:$0xff] }
 0x472   : > { %938 = vrot.lane.b32.xlu0 %v843_v21, %s1463_s13 }
 0x4bb   : > { %v947_v63 = vpop.permute.xlu2 %946 }
 0x4bf   : > { %v937_v34 = vpop.permute.xlu0 %936 }
 0x4d4   : > { %v929_v35 = vpop.permute.xlu1 %928 }
 0x4d5   : > { %v950_v7 = vsel %vm571_vm9, %v664_v36, %v929_v35  ;;  %v1152_v35 = vld [vmem:[%s1554_s25 + $0x58] sm:$0xff]  ;;  %v1151_v36 = vld [vmem:[%s1554_s25 + $0x50] sm:$0xff] }
 0x4d6   : > { %v953_v38 = vsel %vm952_vm0, %v950_v7, %v937_v34  ;;  %v1153_v34 = vld [vmem:[%s1554_s25 + $0x60] sm:$0xff]  ;;  %v1150_v7 = vld [vmem:[%s1554_s25 + $0x48] sm:$0xff] }
 0x4d7   : > { %1160 = vmatpush.msra.mxu2 %v1153_v34 }
 0x4d9   : > { %1161 = vmatpush.msra.mxu2 %v1152_v35 }
 0x4db   : > { %1162 = vmatpush.msra.mxu2 %v1151_v36 }
 0x4dc   : > { %v945_v37 = vpop.permute.xlu0 %944  ;;  %v931_v41 = vpop.permute.xlu1 %930 }
 0x4dd   : > { %v956_v39 = vsel %vm955_vm2, %v953_v38, %v945_v37  ;;  %v951_v43 = vsel %vm571_vm9, %v665_v42, %v931_v41  ;;  %1163 = vmatpush.msra.mxu2 %v1150_v7  ;;  %v1149_v37 = vld [vmem:[%s1554_s25 + $0x40] sm:$0xff]  ;;  %v1148_v38 = vld [vmem:[%s1554_s25 + $0x38] sm:$0xff] }
 0x4de   : > { %1317 = vmatmul.msk.f32.vlgmr.msrb.gmra.mxu0 %vm392_vm1, %v956_v39  ;;  %v1147_v39 = vld [vmem:[%s1554_s25 + $0x30] sm:$0xff]  ;;  %v1145_v41 = vld [vmem:[%s1554_s25 + $0x20] sm:$0xff]  ;;  %v1144_v42 = vld [vmem:[%s1554_s25 + $0x18] sm:$0xff] }
 0x4df   : > { %1164 = vmatpush.msra.mxu2 %v1149_v37 }
 0x4e1   : > { %1165 = vmatpush.msra.mxu2 %v1148_v38 }
 0x4e3   : > { %1166 = vmatpush.msra.mxu2 %v1147_v39 }
 0x4e4   : > { %v939_v44 = vpop.permute.xlu0 %938 }
 0x4e5   : > { %v954_v45 = vsel %vm952_vm0, %v951_v43, %v939_v44  ;;  %1167 = vmatpush.msra.mxu2 %v1146_v40  ;;  %v1143_v43 = vld [vmem:[%s1554_s25 + $0x10] sm:$0xff]  ;;  %v1142_v44 = vld [vmem:[%s1554_s25 + $0x8] sm:$0xff] }
 0x4e6   : > { %v957_v46 = vsel %vm955_vm2, %v954_v45, %v947_v63  ;;  %v1141_v45 = vld [vmem:[%s1554_s25] sm:$0xff] }
 0x4e7   : > { %1318 = vmatmul.msk.f32.gmra.mxu0 %vm392_vm1, %v957_v46  ;;  %1168 = vmatpush.msra.mxu2 %v1145_v41 }
 0x4e9   : > { %1169 = vmatpush.msra.mxu2 %v1144_v42 }
 0x4eb   : > { %1170 = vmatpush.msra.mxu2 %v1143_v43 }
 0x4ed   : > { %1171 = vmatpush.msra.mxu2 %v1142_v44 }
 0x4ef   : > { %1172 = vmatpush.msra.mxu2 %v1141_v45 }
 0x55b   : > { %v989_v47 = vpop.f32.mrf.mxu0 }
 0x55c   : > { %v1718_v48 = vadd.f32 %v989_v47, %v1563_v2 }
 0x55e   : > { %v997_v49 = vmul.f32 %v1718_v48, %v1718_v48 }
 0x560   : > { %v999_v0 = vsel %vm392_vm1, %v997_v49, 0.0 }
 0x561   : > { %1000 = vadd.xlane.f32.xlu1 %v999_v0 }
 0x564   : > { %v992_v50 = vpop.f32.mrf.mxu0 }
 0x565   : > { %v1724_v51 = vadd.f32 %v992_v50, %v1567_v4  ;;  %v1041_v4 = vld [vmem:[%s1549_s22 + $0x50] sm:$0xff] }
 0x566   : > { %1063 = vmatpush.msrb.mxu1 %v1041_v4 }
 0x567   : > { %v998_v52 = vmul.f32 %v1724_v51, %v1724_v51 }
 0x568   : > { %1064 = vmatpush.msrb.mxu1 %v1039_v58 }
 0x569   : > { %v1002_v2 = vsel %vm392_vm1, %v998_v52, 0.0 }
 0x56a   : > { %1003 = vadd.xlane.f32.xlu0 %v1002_v2  ;;  %1065 = vmatpush.msrb.mxu1 %v1037_v59 }
 0x56c   : > { %1066 = vmatpush.msrb.mxu1 %v1035_v1 }
 0x56e   : > { %1067 = vmatpush.msrb.mxu1 %v1033_v5 }
 0x570   : > { %1068 = vmatpush.msrb.mxu1 %v1031_v8 }
 0x5d4   : > { %v1001_v10 = vpop.xlane.xlu1 %1000 }
 0x5d5   : > { %v1005_v11 = vmul.f32 %v1001_v10, %v1593_v31 }
 0x5d7   : > { %v1007_v60 = vadd.f32 1e-05, %v1005_v11 }
 0x5d9   : > { %1410 = vrsqrt.f32 %v1007_v60  ;;  %vm1015_vm4 = vweird.f32 %v1007_v60 }
 0x5dd   : > { %v1004_v12 = vpop.xlane.xlu0 %1003 }
 0x5de   : > { %v1006_v13 = vmul.f32 %v1004_v12, %v1593_v31 }
 0x5df   : > { %v1411_v14 = vpop.eup %1410 }
 0x5e0   : > { %v1010_v15 = vmul.f32 %v1411_v14, %v1007_v60  ;;  %v1008_v16 = vadd.f32 1e-05, %v1006_v13  ;;  %vm1016_vm3 = vweird.f32 %v1411_v14 }
 0x5e1   : > { %vm1017_vm5 = vmor %vm1015_vm4, %vm1016_vm3 }
 0x5e2   : > { %v1011_v17 = vmul.f32 %v1411_v14, %v1010_v15  ;;  %1412 = vrsqrt.f32 %v1008_v16  ;;  %vm1025_vm7 = vweird.f32 %v1008_v16 }
 0x5e4   : > { %v1012_v18 = vmul.f32 0.5, %v1011_v17 }
 0x5e6   : > { %v1013_v19 = vsub.f32 1.5, %v1012_v18 }
 0x5e8   : > { %v1413_v20 = vpop.eup %1412  ;;  %v1014_v21 = vmul.f32 %v1411_v14, %v1013_v19 }
 0x5e9   : > { %v1020_v22 = vmul.f32 %v1413_v20, %v1008_v16  ;;  %vm1026_vm6 = vweird.f32 %v1413_v20 }
 0x5ea   : > { %v1018_v23 = vsel %vm1017_vm5, %v1411_v14, %v1014_v21  ;;  %vm1027_vm8 = vmor %vm1025_vm7, %vm1026_vm6 }
 0x5eb   : > { %v1029_v24 = vmul.f32 %v1018_v23, %v1718_v48  ;;  %v1021_v25 = vmul.f32 %v1413_v20, %v1020_v22 }
 0x5ed   : > { %v1022_v31 = vmul.f32 0.5, %v1021_v25  ;;  %1319 = vmatmul.msk.f32.vlgmr.msrb.gmra.mxu1 %vm392_vm1, %v1029_v24  ;;  %1321 = vmatmul.msk.f32.vlgmr.msrb.gmra.mxu3 %vm392_vm1, %v1029_v24 }
 0x5ef   : > { %v1023_v26 = vsub.f32 1.5, %v1022_v31 }
 0x5f1   : > { %v1024_v27 = vmul.f32 %v1413_v20, %v1023_v26 }
 0x5f3   : > { %v1028_v28 = vsel %vm1027_vm8, %v1413_v20, %v1024_v27 }
 0x5f4   : > { %v1030_v29 = vmul.f32 %v1028_v28, %v1724_v51 }
 0x5f6   : > { %1320 = vmatmul.msk.f32.gmra.mxu1 %vm392_vm1, %v1030_v29  ;;  %1322 = vmatmul.msk.f32.gmra.mxu3 %vm392_vm1, %v1030_v29 }
 0x66a   : > { %v1070_v63 = vpop.f32.mrf.mxu1 }
 0x66b   : > { %v1323_v46 = vmul.f32 -1.442695, %v1070_v63 }
 0x66d   : > { %1414 = vpow2.f32 %v1323_v46 }
 0x670   : > { %v1093_v6 = vpop.f32.mrf.mxu3 }
 0x673   : > { %v1415_v47 = vpop.eup %1414  ;;  %v1073_v49 = vpop.f32.mrf.mxu1 }
 0x674   : > { %v1105_v0 = vadd.f32 1.0, %v1415_v47  ;;  %v1324_v50 = vmul.f32 -1.442695, %v1073_v49 }
 0x676   : > { %1416 = vrcp.f32 %v1105_v0  ;;  %v1118_v56 = vand.u32 2147483648, %v1105_v0  ;;  %v1116_v57 = vand.u32 2147483647, %v1105_v0  ;;  %vm1112_vm10 = vweird.f32 %v1105_v0 }
 0x677   : > { %1418 = vpow2.f32 %v1324_v50 }
 0x678   : > { %v1119_v61 = vor.u32 1.1754944e-38, %v1118_v56  ;;  %vm1117_vm12 = vcmp.eq.f32.partialorder %v1116_v57, 8.507059e+37 }
 0x679   : > { %v1096_v17 = vpop.f32.mrf.mxu3 }
 0x67c   : > { %v1417_v52 = vpop.eup %1416 }
 0x67d   : > { %v1419_v2 = vpop.eup %1418  ;;  %v1108_v53 = vmul.f32 %v1417_v52, %v1105_v0  ;;  %vm1113_vm9 = vweird.f32 %v1417_v52 }
 0x67e   : > { %v1106_v54 = vadd.f32 1.0, %v1419_v2  ;;  %vm1114_vm11 = vmor %vm1112_vm10, %vm1113_vm9 }
 0x67f   : > { %v1109_v55 = vsub.f32 1.0, %v1108_v53 }
 0x680   : > { %1420 = vrcp.f32 %v1106_v54  ;;  %v1133_v10 = vand.u32 2147483648, %v1106_v54  ;;  %v1131_v60 = vand.u32 2147483647, %v1106_v54  ;;  %vm1127_vm14 = vweird.f32 %v1106_v54 }
 0x681   : > { %v1110_v4 = vmul.f32 %v1417_v52, %v1109_v55 }
 0x682   : > { %v1134_v13 = vor.u32 1.1754944e-38, %v1133_v10  ;;  %vm1132_vm0 = vcmp.eq.f32.partialorder %v1131_v60, 8.507059e+37 }
 0x683   : > { %v1111_v58 = vadd.f32 %v1417_v52, %v1110_v4 }
 0x685   : > { %v1115_v59 = vsel %vm1114_vm11, %v1417_v52, %v1111_v58 }
 0x686   : > { %v1421_v62 = vpop.eup %1420  ;;  %v1120_v1 = vsel %vm1117_vm12, %v1119_v61, %v1115_v59 }
 0x687   : > { %v1137_v3 = vmul.f32 %v1120_v1, %v1070_v63  ;;  %v1123_v5 = vmul.f32 %v1421_v62, %v1106_v54  ;;  %vm1128_vm13 = vweird.f32 %v1421_v62 }
 0x688   : > { %vm1129_vm15 = vmor %vm1127_vm14, %vm1128_vm13 }
 0x689   : > { %v1139_v8 = vmul.f32 %v1137_v3, %v1093_v6  ;;  %v1124_v9 = vsub.f32 1.0, %v1123_v5 }
 0x68b   : > { %v1125_v11 = vmul.f32 %v1421_v62, %v1124_v9  ;;  %1173 = vmatmul.f32.vlgmr.msra.gmra.mxu2 %v1139_v8 }
 0x68d   : > { %v1126_v12 = vadd.f32 %v1421_v62, %v1125_v11 }
 0x68f   : > { %v1130_v14 = vsel %vm1129_vm15, %v1421_v62, %v1126_v12 }
 0x690   : > { %v1135_v15 = vsel %vm1132_vm0, %v1134_v13, %v1130_v14 }
 0x691   : > { %v1138_v16 = vmul.f32 %v1135_v15, %v1073_v49 }
 0x693   : > { %v1140_v18 = vmul.f32 %v1138_v16, %v1096_v17 }
 0x695   : > { %1176 = vmatmul.f32.gmra.mxu2 %v1140_v18 }
 0x70e   : > { %v1174_v19 = vpop.f32.mrf.mxu2 }
 0x70f   : > { %v1180_v20 = vadd.f32 %v1174_v19, %v1718_v48 }
 0x711   : > { %1182 = vst.msk [vmem:[#allocation2] sm:$0xff] %vm392_vm1, %v1180_v20 }
 0x717   : > { %1187 = sbr.rel (%p1325_p5) target bundleno = 1822 (0x71e), region = 64 }
 0x718   : > { %v1177_v21 = vpop.f32.mrf.mxu2 }
 0x719   : > { %v1181_v22 = vadd.f32 %v1177_v21, %v1724_v51 }
 0x71b   : > { %1183 = vst.msk [vmem:[#allocation2 + $0x8] sm:$0xff] %vm392_vm1, %v1181_v22 }
 0x71c   : > { %1188 = vst.msk [vmem:[#allocation3] sm:$0xff] %vm392_vm1, %v1180_v20 }
 0x71d   : > { %1189 = vst.msk [vmem:[#allocation3 + $0x8] sm:$0xff] %vm392_vm1, %v1181_v22 }
 0x71e PF: > { %p1340_p6 = scmp.eq.s32.totalorder %s1530_s10, 1  ;;  %s1471_s19 = smov [#allocation3]  }
 0x71f   : > { %s1195_s22 = sshll.u32 %s1471_s19, 4  ;;  %s1197_s20 = sshll.u32 %s1792_s9, 4  ;;  %s1196_s22 = int_to_ptr.vmem [resolvable:$true] %s1195_s22  ;;  %s1198_s20 = int_to_ptr.hbm [resolvable:$true] %s1197_s20 }
 0x720   : > { %s1472_s21 = smov 128   ;;  %s1473_s23 = smov 8  }
 0x721   : > { %1337 = dma.vmem_to_hbm [thread:$0]  (%p1340_p6), %s1196_s22, 256, %s1198_s20, [#allocation4], %s1472_s21, %s1472_s21, %s1473_s23  }
 0x722   : > { %1455 = dma.done.wait (%p1340_p6), [#allocation4], 256  }
 0x723   : > { %1457 = vsyncadd (%p1340_p6), [#allocation4], 4294967040 }
 0x724 PF: > { %s20_s30 = sadd.s32 1, %s1460_s30  }
 0x725   : > { %p17_p7 = scmp.ge.s32.totalorder %s20_s30, 4  }
 0x727   :  { %19 = sbr.rel (!%p17_p7) target bundleno = 1 (0x1), region = 100 }
 0x72c   :  { %1214 = vsyncpa [#allocation4], 1 }
 0x72d   :  { %1216 = vsyncpa [#allocation4 + $0x1], 1 }

</bundles_post_ra>
